<compile_context>
chip_gen: v7x
topology: tpu7x:2x2x1
jax: 0.10.0
libtpu: 0.0.40
codegen_flags: <defaults>
</compile_context>

<pallas_src>
import functools

import numpy as np
import jax
import jax.numpy as jnp
from jax import lax
from jax.experimental import pallas as pl
from jax.experimental.pallas import tpu as pltpu


# ----------------------------- Pallas kernel ------------------------------ #
def _rnn_encoder_kernel(time_steps,
                        x_ref, awn_ref, awm_ref, tmat_ref, kmat_ref, ttmat_ref,
                        unb_ref, umT_ref, dmask_ref, ssum_ref, wlT_ref, lb_ref,
                        o_ref):
    x = x_ref[...]                     # [R, F]      node features (Bb samples, batch-major rows)
    awn = awn_ref[...]                 # [R, N*F]    adj * w_graph_node_features, lane-expanded
    awm = awm_ref[...]                 # [R, N*F]    adj * w_graph_neighbor_messages, lane-expanded
    tmat = tmat_ref[...]               # [F, N*F]    lane-tiling matrix (eye(F) tiled along lanes)
    kmat = kmat_ref[...]               # [N*F, N*F]  F x F identity blocks (neighbor-sum + broadcast)

    # Tile per-node features across the neighbor axis on the MXU:
    #   x_tiled[r, e*F + f] = x[r, f]
    x_tiled = jnp.dot(x, tmat, preferred_element_type=jnp.float32)          # [R, N*F]
    feat = awn * x_tiled               # time-invariant message term (adjacency already folded in)

    # t = 1 peeled analytically: relu(m^0) = 0  =>  m^1 = adj * w_node * x = feat
    def step(_, m):
        r = jnp.maximum(m, 0.0)
        # Non-edge entries of m are exactly zero by induction, so the neighbor
        # sum needs no mask; one [R,NF]@[NF,NF] matmul does reduce + broadcast.
        s = jnp.dot(r, kmat, preferred_element_type=jnp.float32)            # [R, N*F]
        return feat + awm * (s - r)

    if time_steps <= 0:
        m = jnp.zeros_like(feat)
    elif time_steps == 1:
        m = feat
    else:
        # time_steps is small and static -> fully unroll for LLO scheduling.
        m = lax.fori_loop(0, time_steps - 1, step, feat, unroll=True)

    # msg_sum[r, f] = sum_e relu(m)[r, e*F + f]   (strided-lane reduction via MXU)
    msg_sum = jnp.dot(jnp.maximum(m, 0.0), ttmat_ref[...],
                      preferred_element_type=jnp.float32)                    # [R, F]

    # enc = relu(u_node @ x + msg_sum @ u_msg^T), batched over Bb samples via a
    # block-diagonal u_node.
    enc = jnp.maximum(
        jnp.dot(unb_ref[...], x, preferred_element_type=jnp.float32)
        + jnp.dot(msg_sum, umT_ref[...], preferred_element_type=jnp.float32),
        0.0)                                                                 # [R, F]

    # Per-sample flatten without an in-kernel [Bb*N,F]->[Bb,N*F] reshape:
    #   enc_tiled[r, e*F+f] = enc[r, f]             (reuse tmat, MXU)
    #   dmask keeps only lanes with e == (r mod N)  (VPU elementwise)
    #   ssum sums the N rows of each sample         (MXU)
    # => enc_flat[b, n*F + f] = enc[b*N + n, f]
    enc_tiled = jnp.dot(enc, tmat, preferred_element_type=jnp.float32)       # [R, N*F]
    enc_flat = jnp.dot(ssum_ref[...], enc_tiled * dmask_ref[...],
                       preferred_element_type=jnp.float32)                   # [Bb, N*F]

    # Fully-connected layer (output zero-padded to a lane-dense width) + sigmoid.
    out = jnp.dot(enc_flat, wlT_ref[...],
                  preferred_element_type=jnp.float32) + lb_ref[...]          # [Bb, O_pad]
    o_ref[...] = jax.nn.sigmoid(out)


# ------------------------------- wrapper ----------------------------------- #
def _dense_adjacency(all_neighbors, num_nodes):
    """-1-padded neighbor lists [B, N, max_nbrs] -> dense {0,1} float mask [B, N, N]."""
    ids = lax.broadcasted_iota(jnp.int32, (1, 1, 1, num_nodes), 3)
    hit = all_neighbors[..., None] == ids                 # [B, N, max_nbrs, N]  (bool)
    return jnp.any(hit, axis=2).astype(jnp.float32)


def _pick_block_batch(B, N, max_rows=512):
    """Largest divisor of B such that Bb * N <= max_rows (keeps un_big / slabs small)."""
    best = 1
    for bb in range(1, B + 1):
        if B % bb == 0 and bb * N <= max_rows:
            best = bb
    return best


def rnn_encoder_forward(node_features, all_neighbors, params, time_steps, block_batch=None):
    B, N, F = node_features.shape
    O, NF_in = params["linear_weight"].shape
    NF = N * F
    assert NF_in == NF, "fully_connected_layer_input_size must be N * F"

    # samples per grid step (Bb)
    if block_batch is None:
        Bb = _pick_block_batch(B, N)
    else:
        Bb = 1
        for cand in (block_batch, 8, 4, 2, 1):
            if cand and B % cand == 0:
                Bb = cand
                break
    G = B // Bb
    R = Bb * N
    O_pad = ((O + 127) // 128) * 128                      # lane-dense FC output width

    f32 = jnp.float32
    x = node_features.astype(f32)
    adj = _dense_adjacency(all_neighbors, N)              # [B, N, N]

    wn = params["w_graph_node_features"].astype(f32)
    wm = params["w_graph_neighbor_messages"].astype(f32)
    un = params["u_graph_node_features"].astype(f32)
    um = params["u_graph_neighbor_messages"].astype(f32)
    lw = params["linear_weight"].astype(f32)
    lb = params["linear_bias"].astype(f32)

    # Fold adjacency into the edge weights and expand each edge scalar across the
    # F feature lanes:  awn[b, n, e*F + f] = adj[b, n, e] * wn[n, e]
    awn = jnp.repeat(adj * wn[None], F, axis=2).reshape(G, R, NF)
    awm = jnp.repeat(adj * wm[None], F, axis=2).reshape(G, R, NF)
    x_blk = x.reshape(G, R, F)

    eyeF = jnp.eye(F, dtype=f32)
    tmat = jnp.tile(eyeF, (1, N))                         # [F, NF]   lane-tiling matrix
    ttmat = jnp.tile(eyeF, (N, 1))                        # [NF, F]   strided lane-sum matrix
    kmat = jnp.tile(eyeF, (N, N))                         # [NF, NF]  neighbor-sum + broadcast
    un_big = jnp.kron(jnp.eye(Bb, dtype=f32), un)         # [R, R]    block-diagonal u_node
    umT = um.T                                            # [F, F]

    # Flatten helpers: diagonal lane mask + per-sample row-sum selector.
    dmask = (jnp.arange(R)[:, None] % N == jnp.arange(NF)[None, :] // F).astype(f32)   # [R, NF]
    ssum = (jnp.arange(R)[None, :] // N == jnp.arange(Bb)[:, None]).astype(f32)        # [Bb, R]

    # FC weights, transposed and zero-padded to the lane-dense output width.
    wlT = jnp.zeros((NF, O_pad), f32).at[:, :O].set(lw.T)                               # [NF, O_pad]
    lb2 = jnp.zeros((1, O_pad), f32).at[:, :O].set(lb.reshape(1, O))                    # [1, O_pad]

    kernel = functools.partial(_rnn_encoder_kernel, int(time_steps))

    msg_steps = max(int(time_steps) - 1, 0)
    flops_grp = (2 * R * F * NF                           # x_tiled
                 + msg_steps * (2 * R * NF * NF + 4 * R * NF)
                 + 2 * R * NF * F                         # msg_sum
                 + 2 * R * R * F + 2 * R * F * F          # enc
                 + 2 * R * F * NF + R * NF                # enc_tiled + mask
                 + 2 * Bb * R * NF                        # enc_flat
                 + 2 * Bb * NF * O_pad)                   # FC
    bytes_grp = 4 * (R * F + 2 * R * NF + Bb * O_pad)
    const_bytes = 4 * (F * NF + NF * NF + NF * F + R * R + F * F
                       + R * NF + Bb * R + NF * O_pad + O_pad)
    cost = pl.CostEstimate(flops=G * flops_grp,
                           transcendentals=G * Bb * O_pad,
                           bytes_accessed=G * bytes_grp + const_bytes)

    out3 = pl.pallas_call(
        kernel,
        out_shape=jax.ShapeDtypeStruct((G, Bb, O_pad), f32),
        grid_spec=pltpu.PrefetchScalarGridSpec(
            num_scalar_prefetch=0,
            grid=(G,),
            in_specs=[
                pl.BlockSpec((None, R, F), lambda g: (g, 0, 0)),    # node features
                pl.BlockSpec((None, R, NF), lambda g: (g, 0, 0)),   # adj * w_node (lane-expanded)
                pl.BlockSpec((None, R, NF), lambda g: (g, 0, 0)),   # adj * w_msg  (lane-expanded)
                pl.BlockSpec((F, NF), lambda g: (0, 0)),            # lane-tiling matrix
                pl.BlockSpec((NF, NF), lambda g: (0, 0)),           # neighbor-sum matrix
                pl.BlockSpec((NF, F), lambda g: (0, 0)),            # lane-sum matrix
                pl.BlockSpec((R, R), lambda g: (0, 0)),             # block-diag u_node
                pl.BlockSpec((F, F), lambda g: (0, 0)),             # u_msg^T
                pl.BlockSpec((R, NF), lambda g: (0, 0)),            # diagonal lane mask
                pl.BlockSpec((Bb, R), lambda g: (0, 0)),            # per-sample row-sum selector
                pl.BlockSpec((NF, O_pad), lambda g: (0, 0)),        # linear weight^T (lane-padded)
                pl.BlockSpec((1, O_pad), lambda g: (0, 0)),         # linear bias (lane-padded)
            ],
            out_specs=pl.BlockSpec((None, Bb, O_pad), lambda g: (g, 0, 0)),
        ),
        compiler_params=pltpu.CompilerParams(dimension_semantics=("parallel",)),
        cost_estimate=cost,
    )(x_blk, awn, awm, tmat, kmat, ttmat, un_big, umT, dmask, ssum, wlT, lb2)

    return out3[..., :O].reshape(B, O)                    # [B, O]


# ------------------------ pure-JAX reference (check) ----------------------- #
def rnn_encoder_reference(node_features, all_neighbors, params, time_steps):
    B, N, F = node_features.shape
    adj = _dense_adjacency(all_neighbors, N)
    wn = params["w_graph_node_features"]
    wm = params["w_graph_neighbor_messages"]
    un = params["u_graph_node_features"]
    um = params["u_graph_neighbor_messages"]
    lw = params["linear_weight"]
    lb = params["linear_bias"]

    def one(x, a):
        a3 = a[:, :, None]
        feat_term = wn[:, :, None] * x[:, None, :]

        def step(_, m):
            r = jnp.maximum(m, 0.0)
            summed = jnp.sum(a3 * r, axis=1)
            return a3 * (feat_term + wm[:, :, None] * (summed[:, None, :] - r))

        m = lax.fori_loop(0, time_steps, step, jnp.zeros((N, N, F), jnp.float32))
        msg_sum = jnp.sum(jnp.maximum(m, 0.0), axis=1)
        enc = jnp.maximum(un @ x + msg_sum @ um.T, 0.0)
        return jax.nn.sigmoid(lw @ enc.reshape(-1) + lb)

    return jax.vmap(one)(node_features, adj)


# ---------------------------- parameter init -------------------------------- #
def init_params(key, N, F, fc_in, fc_out):
    ks = jax.random.split(key, 6)

    def kaiming_normal(k, shape):               # fan_in = shape[1]
        std = (2.0 / shape[1]) ** 0.5
        return std * jax.random.normal(k, shape, dtype=jnp.float32)

    bound = 1.0 / (fc_in ** 0.5)                # kaiming_uniform(a=sqrt(5)) bound
    return {
        "w_graph_node_features": kaiming_normal(ks[0], (N, N)),
        "w_graph_neighbor_messages": kaiming_normal(ks[1], (N, N)),
        "u_graph_node_features": kaiming_normal(ks[2], (N, N)),
        "u_graph_neighbor_messages": kaiming_normal(ks[3], (F, F)),
        "linear_weight": jax.random.uniform(ks[4], (fc_out, fc_in), jnp.float32, -bound, bound),
        "linear_bias": jax.random.uniform(ks[5], (fc_out,), jnp.float32, -bound, bound),
    }


# --------------------------------- main ------------------------------------- #
if __name__ == "__main__":
    B, N, F = 16, 8, 16         # batch, number_of_nodes, number_of_node_features
    T = 3                       # time_steps
    FC_IN, FC_OUT = N * F, 32   # fully connected layer sizes

    key = jax.random.PRNGKey(0)
    k_feat, k_adj, k_par = jax.random.split(key, 3)

    node_features = jax.random.normal(k_feat, (B, N, F), dtype=jnp.float32)

    # Build a random symmetric adjacency (no self loops), then the -1-padded
    # neighbor-list tensor `all_neighbors` that the PyTorch module consumes.
    adj_np = np.asarray(jax.device_get(jax.random.bernoulli(k_adj, 0.5, (B, N, N))))
    adj_np = np.logical_or(adj_np, np.transpose(adj_np, (0, 2, 1)))
    for b in range(B):
        np.fill_diagonal(adj_np[b], False)
    all_neighbors_np = np.full((B, N, N), -1, dtype=np.int32)
    for b in range(B):
        for n in range(N):
            nbrs = np.nonzero(adj_np[b, n])[0]
            all_neighbors_np[b, n, :len(nbrs)] = nbrs
    all_neighbors = jnp.asarray(all_neighbors_np)

    params = init_params(k_par, N, F, FC_IN, FC_OUT)

    out = rnn_encoder_forward(node_features, all_neighbors, params, T)
    out = jax.block_until_ready(out)

    ref = jax.block_until_ready(rnn_encoder_reference(node_features, all_neighbors, params, T))
    assert out.shape == (B, FC_OUT)
    np.testing.assert_allclose(np.asarray(out), np.asarray(ref), rtol=5e-3, atol=5e-3)

    print("KERNEL_OK")
</pallas_src>

<mosaic_0001>
module attributes {stable_mosaic.version = 11 : i64} {
  func.func @_rnn_encoder_kernel(%arg0: i32, %arg1: memref<1x128x16xf32, #tpu.memory_space<vmem>>, %arg2: memref<1x128x128xf32, #tpu.memory_space<vmem>>, %arg3: memref<1x128x128xf32, #tpu.memory_space<vmem>>, %arg4: memref<16x128xf32, #tpu.memory_space<vmem>>, %arg5: memref<128x128xf32, #tpu.memory_space<vmem>>, %arg6: memref<128x16xf32, #tpu.memory_space<vmem>>, %arg7: memref<128x128xf32, #tpu.memory_space<vmem>>, %arg8: memref<16x16xf32, #tpu.memory_space<vmem>>, %arg9: memref<128x128xf32, #tpu.memory_space<vmem>>, %arg10: memref<16x128xf32, #tpu.memory_space<vmem>>, %arg11: memref<128x128xf32, #tpu.memory_space<vmem>>, %arg12: memref<1x128xf32, #tpu.memory_space<vmem>>, %arg13: memref<1x16x128xf32, #tpu.memory_space<vmem>>) attributes {dimension_semantics = [#tpu.dimension_semantics<parallel>], iteration_bounds = array<i64: 1>, scalar_prefetch = 0 : i64, scratch_operands = 0 : i64, tpu.core_type = #tpu.core_type<tc>, window_params = [{transform_indices = @transform_0, window_bounds = array<i64: 1, 128, 16>}, {transform_indices = @transform_1, window_bounds = array<i64: 1, 128, 128>}, {transform_indices = @transform_2, window_bounds = array<i64: 1, 128, 128>}, {pipeline_mode = #tpu.pipeline_mode<synchronous>, transform_indices = @transform_3, window_bounds = array<i64: 16, 128>}, {pipeline_mode = #tpu.pipeline_mode<synchronous>, transform_indices = @transform_4, window_bounds = array<i64: 128, 128>}, {pipeline_mode = #tpu.pipeline_mode<synchronous>, transform_indices = @transform_5, window_bounds = array<i64: 128, 16>}, {pipeline_mode = #tpu.pipeline_mode<synchronous>, transform_indices = @transform_6, window_bounds = array<i64: 128, 128>}, {pipeline_mode = #tpu.pipeline_mode<synchronous>, transform_indices = @transform_7, window_bounds = array<i64: 16, 16>}, {pipeline_mode = #tpu.pipeline_mode<synchronous>, transform_indices = @transform_8, window_bounds = array<i64: 128, 128>}, {pipeline_mode = #tpu.pipeline_mode<synchronous>, transform_indices = @transform_9, window_bounds = array<i64: 16, 128>}, {pipeline_mode = #tpu.pipeline_mode<synchronous>, transform_indices = @transform_10, window_bounds = array<i64: 128, 128>}, {pipeline_mode = #tpu.pipeline_mode<synchronous>, transform_indices = @transform_11, window_bounds = array<i64: 1, 128>}, {transform_indices = @transform_12, window_bounds = array<i64: 1, 16, 128>}]} {
    %c0 = arith.constant 0 : index
    %c0_0 = arith.constant 0 : index
    %c0_1 = arith.constant 0 : index
    %0 = vector.load %arg1[%c0, %c0_0, %c0_1] : memref<1x128x16xf32, #tpu.memory_space<vmem>>, vector<1x128x16xf32>
    %1 = vector.shape_cast %0 : vector<1x128x16xf32> to vector<128x16xf32>
    %c0_2 = arith.constant 0 : index
    %c0_3 = arith.constant 0 : index
    %c0_4 = arith.constant 0 : index
    %2 = vector.load %arg2[%c0_2, %c0_3, %c0_4] : memref<1x128x128xf32, #tpu.memory_space<vmem>>, vector<1x128x128xf32>
    %3 = vector.shape_cast %2 : vector<1x128x128xf32> to vector<128x128xf32>
    %c0_5 = arith.constant 0 : index
    %c0_6 = arith.constant 0 : index
    %c0_7 = arith.constant 0 : index
    %4 = vector.load %arg3[%c0_5, %c0_6, %c0_7] : memref<1x128x128xf32, #tpu.memory_space<vmem>>, vector<1x128x128xf32>
    %5 = vector.shape_cast %4 : vector<1x128x128xf32> to vector<128x128xf32>
    %c0_8 = arith.constant 0 : index
    %c0_9 = arith.constant 0 : index
    %6 = vector.load %arg4[%c0_8, %c0_9] : memref<16x128xf32, #tpu.memory_space<vmem>>, vector<16x128xf32>
    %c0_10 = arith.constant 0 : index
    %c0_11 = arith.constant 0 : index
    %7 = vector.load %arg5[%c0_10, %c0_11] : memref<128x128xf32, #tpu.memory_space<vmem>>, vector<128x128xf32>
    %cst = arith.constant dense<0.000000e+00> : vector<128x128xf32>
    %8 = tpu.matmul %1, %6, %cst {dimension_numbers = #tpu.dot_dimension_numbers<[1], [0], [0], [1], [0, 0, 1, 1], [], []>} : vector<128x16xf32>, vector<16x128xf32>, vector<128x128xf32> -> vector<128x128xf32>
    %9 = arith.mulf %3, %8 : vector<128x128xf32>
    %c0_i32 = arith.constant 0 : i32
    %cst_12 = arith.constant 0.000000e+00 : f32
    %10 = vector.broadcast %cst_12 : f32 to vector<128x128xf32>
    %11 = arith.maximumf %9, %10 : vector<128x128xf32>
    %cst_13 = arith.constant dense<0.000000e+00> : vector<128x128xf32>
    %12 = tpu.matmul %11, %7, %cst_13 {dimension_numbers = #tpu.dot_dimension_numbers<[1], [0], [0], [1], [0, 0, 1, 1], [], []>} : vector<128x128xf32>, vector<128x128xf32>, vector<128x128xf32> -> vector<128x128xf32>
    %13 = arith.subf %12, %11 : vector<128x128xf32>
    %14 = arith.mulf %5, %13 : vector<128x128xf32>
    %15 = arith.addf %9, %14 : vector<128x128xf32>
    %c1_i32 = arith.constant 1 : i32
    %cst_14 = arith.constant 0.000000e+00 : f32
    %16 = vector.broadcast %cst_14 : f32 to vector<128x128xf32>
    %17 = arith.maximumf %15, %16 : vector<128x128xf32>
    %cst_15 = arith.constant dense<0.000000e+00> : vector<128x128xf32>
    %18 = tpu.matmul %17, %7, %cst_15 {dimension_numbers = #tpu.dot_dimension_numbers<[1], [0], [0], [1], [0, 0, 1, 1], [], []>} : vector<128x128xf32>, vector<128x128xf32>, vector<128x128xf32> -> vector<128x128xf32>
    %19 = arith.subf %18, %17 : vector<128x128xf32>
    %20 = arith.mulf %5, %19 : vector<128x128xf32>
    %21 = arith.addf %9, %20 : vector<128x128xf32>
    %cst_16 = arith.constant 0.000000e+00 : f32
    %22 = vector.broadcast %cst_16 : f32 to vector<128x128xf32>
    %23 = arith.maximumf %21, %22 : vector<128x128xf32>
    %c0_17 = arith.constant 0 : index
    %c0_18 = arith.constant 0 : index
    %24 = vector.load %arg6[%c0_17, %c0_18] : memref<128x16xf32, #tpu.memory_space<vmem>>, vector<128x16xf32>
    %cst_19 = arith.constant dense<0.000000e+00> : vector<128x16xf32>
    %25 = tpu.matmul %23, %24, %cst_19 {dimension_numbers = #tpu.dot_dimension_numbers<[1], [0], [0], [1], [0, 0, 1, 1], [], []>} : vector<128x128xf32>, vector<128x16xf32>, vector<128x16xf32> -> vector<128x16xf32>
    %c0_20 = arith.constant 0 : index
    %c0_21 = arith.constant 0 : index
    %26 = vector.load %arg7[%c0_20, %c0_21] : memref<128x128xf32, #tpu.memory_space<vmem>>, vector<128x128xf32>
    %cst_22 = arith.constant dense<0.000000e+00> : vector<128x16xf32>
    %27 = tpu.matmul %26, %1, %cst_22 {dimension_numbers = #tpu.dot_dimension_numbers<[1], [0], [0], [1], [0, 0, 1, 1], [], []>} : vector<128x128xf32>, vector<128x16xf32>, vector<128x16xf32> -> vector<128x16xf32>
    %c0_23 = arith.constant 0 : index
    %c0_24 = arith.constant 0 : index
    %28 = vector.load %arg8[%c0_23, %c0_24] : memref<16x16xf32, #tpu.memory_space<vmem>>, vector<16x16xf32>
    %cst_25 = arith.constant dense<0.000000e+00> : vector<128x16xf32>
    %29 = tpu.matmul %25, %28, %cst_25 {dimension_numbers = #tpu.dot_dimension_numbers<[1], [0], [0], [1], [0, 0, 1, 1], [], []>} : vector<128x16xf32>, vector<16x16xf32>, vector<128x16xf32> -> vector<128x16xf32>
    %30 = arith.addf %27, %29 : vector<128x16xf32>
    %cst_26 = arith.constant 0.000000e+00 : f32
    %31 = vector.broadcast %cst_26 : f32 to vector<128x16xf32>
    %32 = arith.maximumf %30, %31 : vector<128x16xf32>
    %cst_27 = arith.constant dense<0.000000e+00> : vector<128x128xf32>
    %33 = tpu.matmul %32, %6, %cst_27 {dimension_numbers = #tpu.dot_dimension_numbers<[1], [0], [0], [1], [0, 0, 1, 1], [], []>} : vector<128x16xf32>, vector<16x128xf32>, vector<128x128xf32> -> vector<128x128xf32>
    %c0_28 = arith.constant 0 : index
    %c0_29 = arith.constant 0 : index
    %34 = vector.load %arg10[%c0_28, %c0_29] : memref<16x128xf32, #tpu.memory_space<vmem>>, vector<16x128xf32>
    %c0_30 = arith.constant 0 : index
    %c0_31 = arith.constant 0 : index
    %35 = vector.load %arg9[%c0_30, %c0_31] : memref<128x128xf32, #tpu.memory_space<vmem>>, vector<128x128xf32>
    %36 = arith.mulf %33, %35 : vector<128x128xf32>
    %cst_32 = arith.constant dense<0.000000e+00> : vector<16x128xf32>
    %37 = tpu.matmul %34, %36, %cst_32 {dimension_numbers = #tpu.dot_dimension_numbers<[1], [0], [0], [1], [0, 0, 1, 1], [], []>} : vector<16x128xf32>, vector<128x128xf32>, vector<16x128xf32> -> vector<16x128xf32>
    %c0_33 = arith.constant 0 : index
    %c0_34 = arith.constant 0 : index
    %38 = vector.load %arg11[%c0_33, %c0_34] : memref<128x128xf32, #tpu.memory_space<vmem>>, vector<128x128xf32>
    %cst_35 = arith.constant dense<0.000000e+00> : vector<16x128xf32>
    %39 = tpu.matmul %37, %38, %cst_35 {dimension_numbers = #tpu.dot_dimension_numbers<[1], [0], [0], [1], [0, 0, 1, 1], [], []>} : vector<16x128xf32>, vector<128x128xf32>, vector<16x128xf32> -> vector<16x128xf32>
    %c0_36 = arith.constant 0 : index
    %c0_37 = arith.constant 0 : index
    %40 = vector.load %arg12[%c0_36, %c0_37] : memref<1x128xf32, #tpu.memory_space<vmem>>, vector<1x128xf32>
    %41 = vector.broadcast %40 : vector<1x128xf32> to vector<16x128xf32>
    %42 = arith.addf %39, %41 : vector<16x128xf32>
    %43 = arith.negf %42 : vector<16x128xf32>
    %44 = math.exp %43 : vector<16x128xf32>
    %cst_38 = arith.constant 1.000000e+00 : f32
    %45 = vector.broadcast %cst_38 : f32 to vector<16x128xf32>
    %46 = arith.addf %45, %44 : vector<16x128xf32>
    %47 = arith.divf %45, %46 : vector<16x128xf32>
    %c0_39 = arith.constant 0 : index
    %c0_40 = arith.constant 0 : index
    %c0_41 = arith.constant 0 : index
    %48 = vector.load %arg13[%c0_39, %c0_40, %c0_41] : memref<1x16x128xf32, #tpu.memory_space<vmem>>, vector<1x16x128xf32>
    %49 = vector.shape_cast %48 : vector<1x16x128xf32> to vector<16x128xf32>
    %50 = vector.shape_cast %47 : vector<16x128xf32> to vector<1x16x128xf32>
    tpu.vector_store %arg13[%c0_39, %c0_40, %c0_41], %50 {strides = array<i32>} : memref<1x16x128xf32, #tpu.memory_space<vmem>>, vector<1x16x128xf32>,
    return
  }
  func.func @transform_0(%arg0: i32) -> (i32, i32, i32) {
    %c0_i32 = arith.constant 0 : i32
    %c0_i32_0 = arith.constant 0 : i32
    %c0_i32_1 = arith.constant 0 : i32
    return %arg0, %c0_i32, %c0_i32_0 : i32, i32, i32
  }
  func.func @transform_1(%arg0: i32) -> (i32, i32, i32) {
    %c0_i32 = arith.constant 0 : i32
    %c0_i32_0 = arith.constant 0 : i32
    %c0_i32_1 = arith.constant 0 : i32
    return %arg0, %c0_i32, %c0_i32_0 : i32, i32, i32
  }
  func.func @transform_2(%arg0: i32) -> (i32, i32, i32) {
    %c0_i32 = arith.constant 0 : i32
    %c0_i32_0 = arith.constant 0 : i32
    %c0_i32_1 = arith.constant 0 : i32
    return %arg0, %c0_i32, %c0_i32_0 : i32, i32, i32
  }
  func.func @transform_3(%arg0: i32) -> (i32, i32) {
    %c0_i32 = arith.constant 0 : i32
    %c0_i32_0 = arith.constant 0 : i32
    %c0_i32_1 = arith.constant 0 : i32
    return %c0_i32, %c0_i32_0 : i32, i32
  }
  func.func @transform_4(%arg0: i32) -> (i32, i32) {
    %c0_i32 = arith.constant 0 : i32
    %c0_i32_0 = arith.constant 0 : i32
    %c0_i32_1 = arith.constant 0 : i32
    return %c0_i32, %c0_i32_0 : i32, i32
  }
  func.func @transform_5(%arg0: i32) -> (i32, i32) {
    %c0_i32 = arith.constant 0 : i32
    %c0_i32_0 = arith.constant 0 : i32
    %c0_i32_1 = arith.constant 0 : i32
    return %c0_i32, %c0_i32_0 : i32, i32
  }
  func.func @transform_6(%arg0: i32) -> (i32, i32) {
    %c0_i32 = arith.constant 0 : i32
    %c0_i32_0 = arith.constant 0 : i32
    %c0_i32_1 = arith.constant 0 : i32
    return %c0_i32, %c0_i32_0 : i32, i32
  }
  func.func @transform_7(%arg0: i32) -> (i32, i32) {
    %c0_i32 = arith.constant 0 : i32
    %c0_i32_0 = arith.constant 0 : i32
    %c0_i32_1 = arith.constant 0 : i32
    return %c0_i32, %c0_i32_0 : i32, i32
  }
  func.func @transform_8(%arg0: i32) -> (i32, i32) {
    %c0_i32 = arith.constant 0 : i32
    %c0_i32_0 = arith.constant 0 : i32
    %c0_i32_1 = arith.constant 0 : i32
    return %c0_i32, %c0_i32_0 : i32, i32
  }
  func.func @transform_9(%arg0: i32) -> (i32, i32) {
    %c0_i32 = arith.constant 0 : i32
    %c0_i32_0 = arith.constant 0 : i32
    %c0_i32_1 = arith.constant 0 : i32
    return %c0_i32, %c0_i32_0 : i32, i32
  }
  func.func @transform_10(%arg0: i32) -> (i32, i32) {
    %c0_i32 = arith.constant 0 : i32
    %c0_i32_0 = arith.constant 0 : i32
    %c0_i32_1 = arith.constant 0 : i32
    return %c0_i32, %c0_i32_0 : i32, i32
  }
  func.func @transform_11(%arg0: i32) -> (i32, i32) {
    %c0_i32 = arith.constant 0 : i32
    %c0_i32_0 = arith.constant 0 : i32
    %c0_i32_1 = arith.constant 0 : i32
    return %c0_i32, %c0_i32_0 : i32, i32
  }
  func.func @transform_12(%arg0: i32) -> (i32, i32, i32) {
    %c0_i32 = arith.constant 0 : i32
    %c0_i32_0 = arith.constant 0 : i32
    %c0_i32_1 = arith.constant 0 : i32
    return %arg0, %c0_i32, %c0_i32_0 : i32, i32, i32
  }
}

</mosaic_0001>

<bundles_post_ra>
// kernel: tpu_custom_call.1
= control target key start
LH: loop header
LB: loop body
LE: loop exit
PB: predicated region body
PF: predicated region fallthrough
CT: control target
= control target key end

     0   :  { %17 = vsyncpa [#allocation3], 0  ;;  %s3581_s0 = inlined_call_operand.vmem [shape: f32[1,128,16], index: 0, kind: input, shape index: {}]   ;;  %s3582_s1 = inlined_call_operand.vmem [shape: f32[1,128,128], index: 1, kind: input, shape index: {}]   ;;  %s3583_s2 = inlined_call_operand.vmem [shape: f32[1,128,128], index: 2, kind: input, shape index: {}]   ;;  %s3584_s3 = inlined_call_operand.vmem [shape: f32[16,128], index: 3, kind: input, shape index: {}]   ;;  %s3585_s4 = inlined_call_operand.hbm [shape: f32[128,128], index: 4, kind: input, shape index: {}]   ;;  %s3586_s5 = inlined_call_operand.vmem [shape: f32[128,16], index: 5, kind: input, shape index: {}]   ;;  %s3587_s6 = inlined_call_operand.hbm [shape: f32[128,128], index: 6, kind: input, shape index: {}]   ;;  %s3588_s7 = inlined_call_operand.vmem [shape: f32[16,16], index: 7, kind: input, shape index: {}]   ;;  %s3589_s8 = inlined_call_operand.hbm [shape: f32[128,128], index: 8, kind: input, shape index: {}]   ;;  %s3590_s9 = inlined_call_operand.vmem [shape: f32[16,128], index: 9, kind: input, shape index: {}]   ;;  %s3591_s10 = inlined_call_operand.hbm [shape: f32[128,128], index: 10, kind: input, shape index: {}]   ;;  %s3592_s11 = inlined_call_operand.vmem [shape: f32[1,128], index: 11, kind: input, shape index: {}]   ;;  %s3593_s12 = inlined_call_operand.hbm [shape: f32[1,16,128], index: 12, kind: output, shape index: {}]  }
   0x1   :  { %18 = vsyncpa [#allocation6], 0 }
   0x2   :  { %19 = vsyncpa [#allocation9], 0 }
   0x3   :  { %20 = vsyncpa [#allocation4], 0  ;;  %s2773_s21 = smov [#allocation5]   ;;  %s2774_s23 = smov [#allocation2]  }
   0x4   :  { %s48_s22 = sshll.u32 %s2773_s21, 4  ;;  %s34_s24 = sshll.u32 %s2774_s23, 4  ;;  %s49_s22 = int_to_ptr.vmem [resolvable:$true] %s48_s22  ;;  %s2845_s24 = int_to_ptr.vmem [resolvable:$true] %s34_s24 }
   0x5   :  { %s2655_s27 = scalar_lea.hbm %s3587_s6, 2048 }
   0x6   :  { %p2656_p0 = scmp.ne.s32.totalorder %s3587_s6, %s2655_s27  ;;  %p2659_p1 = scmp.lt.u32.totalorder %s2655_s27, %s3587_s6 }
   0x8   :  { %p2661_p2 = pnand %p2659_p1, %p2656_p0 }
   0xa   :  { %2664 = shalt.err (!%p2661_p2)
}
   0xb   :  { %s2665_s14 = scalar_lea.vmem %s49_s22, 2048  ;;  %p2670_p4 = scmp.lt.s32.totalorder %s49_s22, %s49_s22 }
   0xc   :  { %p2666_p3 = scmp.ne.s32.totalorder %s49_s22, %s2665_s14  ;;  %p2671_p5 = scmp.lt.s32.totalorder %s2665_s14, %s2665_s14 }
   0xe   :  { %p2672_p6 = por %p2671_p5, %p2670_p4 }
  0x10   :  { %p2673_p7 = pnand %p2672_p6, %p2666_p3 }
  0x12   :  { %2676 = shalt.err (!%p2673_p7)
}
  0x13   :  { %s2775_s15 = smov 128   ;;  %s2776_s16 = smov 8  }
  0x14   :  { %54 = dma.hbm_to_vmem [thread:$0]  %s3587_s6, 2048, %s49_s22, [#allocation6], %s2775_s15, %s2775_s15, %s2776_s16  }
  0x15   :  { %s2677_s21 = scalar_lea.hbm %s3585_s4, 2048 }
  0x16   :  { %p2678_p8 = scmp.ne.s32.totalorder %s3585_s4, %s2677_s21  ;;  %p2681_p9 = scmp.lt.u32.totalorder %s2677_s21, %s3585_s4 }
  0x18   :  { %p2683_p10 = pnand %p2681_p9, %p2678_p8 }
  0x1a   :  { %2686 = shalt.err (!%p2683_p10)
}
  0x1b   :  { %s2687_s28 = scalar_lea.vmem %s2845_s24, 2048  ;;  %p2692_p12 = scmp.lt.s32.totalorder %s2845_s24, %s2845_s24 }
  0x1c   :  { %p2688_p11 = scmp.ne.s32.totalorder %s2845_s24, %s2687_s28  ;;  %p2693_p13 = scmp.lt.s32.totalorder %s2687_s28, %s2687_s28 }
  0x1e   :  { %p2694_p0 = por %p2693_p13, %p2692_p12 }
  0x20   :  { %p2695_p1 = pnand %p2694_p0, %p2688_p11 }
  0x22   :  { %2698 = shalt.err (!%p2695_p1)
}
  0x23   :  { %40 = dma.hbm_to_vmem [thread:$0]  %s3585_s4, 2048, %s2845_s24, [#allocation3], %s2775_s15, %s2775_s15, %s2776_s16  }
  0x24   :  { %s2777_s29 = smov [#allocation7]   ;;  %s2778_s13 = smov [#allocation8]  }
  0x25   :  { %s62_s30 = sshll.u32 %s2777_s29, 4  ;;  %s76_s14 = sshll.u32 %s2778_s13, 4  ;;  %s63_s30 = int_to_ptr.vmem [resolvable:$true] %s62_s30  ;;  %s2882_s14 = int_to_ptr.vmem [resolvable:$true] %s76_s14 }
  0x26   :  { %s2699_s19 = scalar_lea.hbm %s3589_s8, 2048 }
  0x27   :  { %p2700_p2 = scmp.ne.s32.totalorder %s3589_s8, %s2699_s19  ;;  %p2703_p3 = scmp.lt.u32.totalorder %s2699_s19, %s3589_s8 }
  0x29   :  { %p2705_p4 = pnand %p2703_p3, %p2700_p2 }
  0x2b   :  { %2708 = shalt.err (!%p2705_p4)
}
  0x2c   :  { %s2709_s4 = scalar_lea.vmem %s63_s30, 2048  ;;  %p2714_p6 = scmp.lt.s32.totalorder %s63_s30, %s63_s30 }
  0x2d   :  { %p2710_p5 = scmp.ne.s32.totalorder %s63_s30, %s2709_s4  ;;  %p2715_p7 = scmp.lt.s32.totalorder %s2709_s4, %s2709_s4 }
  0x2f   :  { %p2716_p8 = por %p2715_p7, %p2714_p6 }
  0x31   :  { %p2717_p9 = pnand %p2716_p8, %p2710_p5 }
  0x33   :  { %2720 = shalt.err (!%p2717_p9)
}
  0x34   :  { %68 = dma.hbm_to_vmem [thread:$0]  %s3589_s8, 2048, %s63_s30, [#allocation6], %s2775_s15, %s2775_s15, %s2776_s16  }
  0x35   :  { %s2721_s6 = scalar_lea.hbm %s3591_s10, 2048 }
  0x36   :  { %p2722_p10 = scmp.ne.s32.totalorder %s3591_s10, %s2721_s6  ;;  %p2725_p11 = scmp.lt.u32.totalorder %s2721_s6, %s3591_s10 }
  0x38   :  { %p2727_p12 = pnand %p2725_p11, %p2722_p10 }
  0x3a   :  { %2730 = shalt.err (!%p2727_p12)
}
  0x3b   :  { %s2731_s18 = scalar_lea.vmem %s2882_s14, 2048  ;;  %p2736_p0 = scmp.lt.s32.totalorder %s2882_s14, %s2882_s14 }
  0x3c   :  { %p2732_p13 = scmp.ne.s32.totalorder %s2882_s14, %s2731_s18  ;;  %p2737_p1 = scmp.lt.s32.totalorder %s2731_s18, %s2731_s18 }
  0x3e   :  { %p2738_p2 = por %p2737_p1, %p2736_p0 }
  0x40   :  { %p2739_p3 = pnand %p2738_p2, %p2732_p13 }
  0x42   :  { %2742 = shalt.err (!%p2739_p3)
}
  0x43   :  { %82 = dma.hbm_to_vmem [thread:$0]  %s3591_s10, 2048, %s2882_s14, [#allocation9], %s2775_s15, %s2775_s15, %s2776_s16  }
  0x44   :  { %2765 = dma.done.wait [#allocation3], 2048  }
  0x45   :  { %2766 = vsyncadd [#allocation3], 4294965248 }
  0x46   :  { %2767 = dma.done.wait [#allocation6], 4096  }
  0x47   :  { %2768 = vsyncadd [#allocation6], 4294963200 }
  0x48   :  { %2769 = dma.done.wait [#allocation9], 2048  }
  0x49   :  { %2770 = vsyncadd [#allocation9], 4294965248  ;;  %vm163_vm0 = vcmask 130048   ;;  %v145_v0 = vld [vmem:[%s3584_s3] sm:$0xff]  ;;  %v146_v1 = vld [vmem:[%s3584_s3 + $0x8] sm:$0xff] }
  0x4a   :  { %v97_v2 = vld [vmem:[%s3581_s0] sm:$0xff]  ;;  %v2928_v3 = vpack.c.bf16 %v146_v1, %v145_v0  ;;  %v98_v4 = vld [vmem:[%s3581_s0 + $0x8] sm:$0xff]  ;;  %v2941_v6 = vld [vmem:[%s3581_s0 + $0x10] sm:$0xff] }
  0x4b   :  { %2046 = vmatprep.mubr.msk.f32.mxu0 %vm163_vm0, %v97_v2  ;;  %v2934_v5 = vpack.c.bf16 %v98_v4, %v97_v2  ;;  %3630 = vst [vmem:[#allocation16_spill] sm:$0xff] %v2941_v6  ;;  %v147_v7 = vld [vmem:[#allocation2] sm:$0xff]  ;;  %v148_v8 = vld [vmem:[#allocation2 + $0x8] sm:$0xff]  ;;  %v149_v9 = vld [vmem:[#allocation2 + $0x10] sm:$0xff] }
  0x4c   :  { %2421 = vmatprep.subr.bf16.mxu0 %v2928_v3  ;;  %v2424_v10 = vpack.c.bf16 %v148_v8, %v147_v7  ;;  %v150_v11 = vld [vmem:[#allocation2 + $0x18] sm:$0xff]  ;;  %v2949_v12 = vld [vmem:[%s3581_s0 + $0x18] sm:$0xff]  ;;  %v151_v14 = vld [vmem:[#allocation2 + $0x20] sm:$0xff] }
  0x4d   :  { %3629 = vst [vmem:[#allocation15_spill] sm:$0xff] %v2934_v5  ;;  %2423 = vmatpush3.bf16.msra.mxu0 %v2928_v3  ;;  %3631 = vst [vmem:[#allocation17_spill] sm:$0xff] %v2949_v12  ;;  %v2428_v13 = vpack.c.bf16 %v150_v11, %v149_v9  ;;  %v152_v15 = vld [vmem:[#allocation2 + $0x28] sm:$0xff]  ;;  %v2954_v16 = vld [vmem:[%s3581_s0 + $0x20] sm:$0xff] }
  0x4e   :  { %3632 = vst [vmem:[#allocation18_spill] sm:$0xff] %v2954_v16  ;;  %2425 = vmatprep.subr.bf16.mxu1 %v2424_v10  ;;  %2457 = vmatprep.subr.bf16.mxu0 %v2424_v10  ;;  %v2432_v17 = vpack.c.bf16 %v152_v15, %v151_v14  ;;  %v2963_v18 = vld [vmem:[%s3581_s0 + $0x28] sm:$0xff]  ;;  %v153_v19 = vld [vmem:[#allocation2 + $0x30] sm:$0xff]  ;;  %v2968_v21 = vld [vmem:[%s3581_s0 + $0x30] sm:$0xff] }
  0x4f   :  { %2427 = vmatpush3.bf16.msra.mxu1 %v2424_v10  ;;  %3633 = vst [vmem:[#allocation19_spill] sm:$0xff] %v2963_v18  ;;  %v154_v20 = vld [vmem:[#allocation2 + $0x38] sm:$0xff]  ;;  %3634 = vst [vmem:[#allocation20_spill] sm:$0xff] %v2968_v21  ;;  %v2977_v23 = vld [vmem:[%s3581_s0 + $0x38] sm:$0xff] }
  0x50   :  { %2047 = vmatmul.mubr.msk.f32.vlgmr.msra.gmra.mrb[0].mxu0 %vm163_vm0, %v98_v4  ;;  %2429 = vmatprep.subr.bf16.mxu1 %v2428_v13  ;;  %v2436_v22 = vpack.c.bf16 %v154_v20, %v153_v19  ;;  %3635 = vst [vmem:[#allocation21_spill] sm:$0xff] %v2977_v23  ;;  %v155_v24 = vld [vmem:[#allocation2 + $0x40] sm:$0xff]  ;;  %v156_v25 = vld [vmem:[#allocation2 + $0x48] sm:$0xff]  ;;  %v2982_v26 = vld [vmem:[%s3581_s0 + $0x40] sm:$0xff] }
  0x51   :  { %2049 = vmatprep.mubr.msk.f32.mxu0 %vm163_vm0, %v2941_v6  ;;  %2459 = vmatpush3.bf16.msra.mxu0 %v2424_v10  ;;  %3636 = vst [vmem:[#allocation22_spill] sm:$0xff] %v2982_v26  ;;  %v2440_v27 = vpack.c.bf16 %v156_v25, %v155_v24  ;;  %v2991_v28 = vld [vmem:[%s3581_s0 + $0x48] sm:$0xff]  ;;  %v157_v29 = vld [vmem:[#allocation2 + $0x50] sm:$0xff]  ;;  %v2996_v31 = vld [vmem:[%s3581_s0 + $0x50] sm:$0xff] }
  0x52   :  { %2461 = vmatprep.subr.bf16.mxu0 %v2428_v13  ;;  %3637 = vst [vmem:[#allocation23_spill] sm:$0xff] %v2991_v28  ;;  %v158_v30 = vld [vmem:[#allocation2 + $0x58] sm:$0xff]  ;;  %3638 = vst [vmem:[#allocation24_spill] sm:$0xff] %v2996_v31  ;;  %v3005_v33 = vld [vmem:[%s3581_s0 + $0x58] sm:$0xff] }
  0x53   :  { %2431 = vmatpush3.bf16.msra.mxu1 %v2428_v13  ;;  %v2444_v32 = vpack.c.bf16 %v158_v30, %v157_v29  ;;  %3639 = vst [vmem:[#allocation25_spill] sm:$0xff] %v3005_v33  ;;  %v159_v34 = vld [vmem:[#allocation2 + $0x60] sm:$0xff]  ;;  %v160_v35 = vld [vmem:[#allocation2 + $0x68] sm:$0xff]  ;;  %v3010_v36 = vld [vmem:[%s3581_s0 + $0x60] sm:$0xff] }
  0x54   :  { %2050 = vmatmul.mubr.msk.f32.gmra.mrb[2].mxu0 %vm163_vm0, %v2949_v12  ;;  %2433 = vmatprep.subr.bf16.mxu1 %v2432_v17  ;;  %3640 = vst [vmem:[#allocation26_spill] sm:$0xff] %v3010_v36  ;;  %v2448_v37 = vpack.c.bf16 %v160_v35, %v159_v34  ;;  %v3019_v38 = vld [vmem:[%s3581_s0 + $0x68] sm:$0xff]  ;;  %v3024_v39 = vld [vmem:[%s3581_s0 + $0x70] sm:$0xff]  ;;  %v3033_v40 = vld [vmem:[%s3581_s0 + $0x78] sm:$0xff] }
  0x55   :  { %2052 = vmatprep.mubr.msk.f32.mxu0 %vm163_vm0, %v2954_v16  ;;  %2463 = vmatpush3.bf16.msra.mxu0 %v2428_v13  ;;  %3641 = vst [vmem:[#allocation27_spill] sm:$0xff] %v3019_v38  ;;  %3642 = vst [vmem:[#allocation28_spill] sm:$0xff] %v3024_v39  ;;  %v161_v41 = vld [vmem:[#allocation2 + $0x70] sm:$0xff]  ;;  %v162_v42 = vld [vmem:[#allocation2 + $0x78] sm:$0xff] }
  0x56   :  { %2465 = vmatprep.subr.bf16.mxu0 %v2432_v17  ;;  %3643 = vst [vmem:[#allocation29_spill] sm:$0xff] %v3033_v40  ;;  %v2452_v43 = vpack.c.bf16 %v162_v42, %v161_v41  ;;  %v114_v44 = vld [vmem:[%s3582_s1 + $0x8] sm:$0xff]  ;;  %v113_v45 = vld [vmem:[%s3582_s1] sm:$0xff]  ;;  %v116_v50 = vld [vmem:[%s3582_s1 + $0x18] sm:$0xff] }
  0x57   :  { %2435 = vmatpush3.bf16.msra.mxu1 %v2432_v17  ;;  %v115_v51 = vld [vmem:[%s3582_s1 + $0x10] sm:$0xff]  ;;  %v118_v58 = vld [vmem:[%s3582_s1 + $0x28] sm:$0xff]  ;;  %v117_v59 = vld [vmem:[%s3582_s1 + $0x20] sm:$0xff] }
  0x58   :  { %2053 = vmatmul.mubr.msk.f32.gmra.mrb[4].mxu0 %vm163_vm0, %v2963_v18  ;;  %2437 = vmatprep.subr.bf16.mxu1 %v2436_v22  ;;  %v120_v2 = vld [vmem:[%s3582_s1 + $0x38] sm:$0xff]  ;;  %v119_v4 = vld [vmem:[%s3582_s1 + $0x30] sm:$0xff]  ;;  %v122_v14 = vld [vmem:[%s3582_s1 + $0x48] sm:$0xff] }
  0x59   :  { %2055 = vmatprep.mubr.msk.f32.mxu0 %vm163_vm0, %v2968_v21  ;;  %2467 = vmatpush3.bf16.msra.mxu0 %v2432_v17  ;;  %v121_v15 = vld [vmem:[%s3582_s1 + $0x40] sm:$0xff]  ;;  %v123_v29 = vld [vmem:[%s3582_s1 + $0x50] sm:$0xff]  ;;  %v126_v42 = vld [vmem:[%s3582_s1 + $0x68] sm:$0xff] }
  0x5a   :  { %2469 = vmatprep.subr.bf16.mxu0 %v2436_v22 }
  0x5b   :  { %2439 = vmatpush3.bf16.msra.mxu1 %v2436_v22 }
  0x5c   :  { %2056 = vmatmul.mubr.msk.f32.gmra.mrb[6].mxu0 %vm163_vm0, %v2977_v23  ;;  %2441 = vmatprep.subr.bf16.mxu1 %v2440_v27 }
  0x5d   :  { %2058 = vmatprep.mubr.msk.f32.mxu0 %vm163_vm0, %v2982_v26  ;;  %2471 = vmatpush3.bf16.msra.mxu0 %v2436_v22 }
  0x5e   :  { %2473 = vmatprep.subr.bf16.mxu0 %v2440_v27 }
  0x5f   :  { %2443 = vmatpush3.bf16.msra.mxu1 %v2440_v27 }
  0x60   :  { %2059 = vmatmul.mubr.msk.f32.gmra.mrb[8].mxu0 %vm163_vm0, %v2991_v28  ;;  %2445 = vmatprep.subr.bf16.mxu1 %v2444_v32 }
  0x61   :  { %2061 = vmatprep.mubr.msk.f32.mxu0 %vm163_vm0, %v2996_v31  ;;  %2475 = vmatpush3.bf16.msra.mxu0 %v2440_v27  ;;  %v124_v27 = vld [vmem:[%s3582_s1 + $0x58] sm:$0xff] }
  0x62   :  { %2477 = vmatprep.subr.bf16.mxu0 %v2444_v32 }
  0x63   :  { %2447 = vmatpush3.bf16.msra.mxu1 %v2444_v32 }
  0x64   :  { %2062 = vmatmul.mubr.msk.f32.gmra.mrb[10].mxu0 %vm163_vm0, %v3005_v33  ;;  %2449 = vmatprep.subr.bf16.mxu1 %v2448_v37 }
  0x65   :  { %2064 = vmatprep.mubr.msk.f32.mxu0 %vm163_vm0, %v3010_v36  ;;  %2479 = vmatpush3.bf16.msra.mxu0 %v2444_v32 }
  0x66   :  { %2481 = vmatprep.subr.bf16.mxu0 %v2448_v37 }
  0x67   :  { %2451 = vmatpush3.bf16.msra.mxu1 %v2448_v37 }
  0x68   :  { %2065 = vmatmul.mubr.msk.f32.gmra.mrb[12].mxu0 %vm163_vm0, %v3019_v38  ;;  %2453 = vmatprep.subr.bf16.mxu1 %v2452_v43 }
  0x69   :  { %2067 = vmatprep.mubr.msk.f32.mxu0 %vm163_vm0, %v3024_v39  ;;  %2483 = vmatpush3.bf16.msra.mxu0 %v2448_v37 }
  0x6a   :  { %2485 = vmatprep.subr.bf16.mxu0 %v2452_v43 }
  0x6b   :  { %2455 = vmatpush3.bf16.msra.mxu1 %v2452_v43 }
  0x6c   :  { %2068 = vmatmul.mubr.msk.f32.gmra.mrb[14].mxu0 %vm163_vm0, %v3033_v40 }
  0x6d   :  { %2487 = vmatpush3.bf16.msra.mxu0 %v2452_v43  ;;  %v125_v43 = vld [vmem:[%s3582_s1 + $0x60] sm:$0xff] }
 0x123   :  { %v2048_v46 = vpop.f32.mrb[0].mxu0 }
 0x124   :  { %v3043_v47 = vmul.f32 %v2048_v46, %v114_v44  ;;  %v278_v48 = vpop.f32.mrb[1].mxu0 }
 0x125   :  { %v3045_v49 = vmul.f32 %v278_v48, %v113_v45 }
 0x126   :  { %v374_v56 = vmax.f32 %v3043_v47, 0.0 }
 0x127   :  { %v2051_v52 = vpop.f32.mrb[2].mxu0  ;;  %v373_v53 = vmax.f32 %v3045_v49, 0.0 }
 0x128   :  { %v3054_v54 = vmul.f32 %v2051_v52, %v116_v50  ;;  %v288_v55 = vpop.f32.mrb[3].mxu0  ;;  %v128_v52 = vld [vmem:[%s3582_s1 + $0x78] sm:$0xff] }
 0x129   :  { %v3057_v57 = vmul.f32 %v288_v55, %v115_v51  ;;  %2102 = vmatprep.mubr.f32.mxu1 %v373_v53  ;;  %v127_v55 = vld [vmem:[%s3582_s1 + $0x70] sm:$0xff] }
 0x12a   :  { %2103 = vmatmul.mubr.f32.vlgmr.msra.gmra.mrb[0].mxu1 %v374_v56  ;;  %v376_v0 = vmax.f32 %v3054_v54, 0.0 }
 0x12b   :  { %v2054_v60 = vpop.f32.mrb[4].mxu0  ;;  %v375_v61 = vmax.f32 %v3057_v57, 0.0 }
 0x12c   :  { %v3070_v62 = vmul.f32 %v2054_v60, %v118_v58  ;;  %v298_v63 = vpop.f32.mrb[5].mxu0 }
 0x12d   :  { %v3073_v1 = vmul.f32 %v298_v63, %v117_v59  ;;  %2105 = vmatprep.mubr.f32.mxu1 %v375_v61 }
 0x12e   :  { %2106 = vmatmul.mubr.f32.gmra.mrb[2].mxu1 %v376_v0  ;;  %v378_v11 = vmax.f32 %v3070_v62, 0.0 }
 0x12f   :  { %v2057_v7 = vpop.f32.mrb[6].mxu0  ;;  %v377_v8 = vmax.f32 %v3073_v1, 0.0 }
 0x130   :  { %v3086_v9 = vmul.f32 %v2057_v7, %v120_v2  ;;  %v308_v10 = vpop.f32.mrb[7].mxu0 }
 0x131   :  { %v3089_v13 = vmul.f32 %v308_v10, %v119_v4  ;;  %2108 = vmatprep.mubr.f32.mxu1 %v377_v8 }
 0x132   :  { %2109 = vmatmul.mubr.f32.gmra.mrb[4].mxu1 %v378_v11  ;;  %v380_v24 = vmax.f32 %v3086_v9, 0.0 }
 0x133   :  { %v2060_v17 = vpop.f32.mrb[8].mxu0  ;;  %v379_v19 = vmax.f32 %v3089_v13, 0.0 }
 0x134   :  { %v3102_v20 = vmul.f32 %v2060_v17, %v122_v14  ;;  %v318_v22 = vpop.f32.mrb[9].mxu0  ;;  %v807_v14 = vld [vmem:[%s3586_s5] sm:$0xff]  ;;  %v809_v17 = vld [vmem:[%s3586_s5 + $0x10] sm:$0xff] }
 0x135   :  { %v3105_v25 = vmul.f32 %v318_v22, %v121_v15  ;;  %2111 = vmatprep.mubr.f32.mxu1 %v379_v19  ;;  %v808_v15 = vld [vmem:[%s3586_s5 + $0x8] sm:$0xff] }
 0x136   :  { %2112 = vmatmul.mubr.f32.gmra.mrb[6].mxu1 %v380_v24  ;;  %v382_v37 = vmax.f32 %v3102_v20, 0.0  ;;  %v2488_v22 = vpack.c.bf16 %v808_v15, %v807_v14  ;;  %v818_v14 = vld [vmem:[%s3586_s5 + $0x58] sm:$0xff] }
 0x137   :  { %v2063_v30 = vpop.f32.mrb[10].mxu0  ;;  %v381_v32 = vmax.f32 %v3105_v25, 0.0 }
 0x138   :  { %v3118_v34 = vmul.f32 %v2063_v30, %v124_v27  ;;  %v328_v35 = vpop.f32.mrb[11].mxu0  ;;  %v810_v27 = vld [vmem:[%s3586_s5 + $0x18] sm:$0xff]  ;;  %v811_v30 = vld [vmem:[%s3586_s5 + $0x20] sm:$0xff]  ;;  %2489 = vmatprep.subr.bf16.mxu1 %v2488_v22 }
 0x139   :  { %v3121_v41 = vmul.f32 %v328_v35, %v123_v29  ;;  %2114 = vmatprep.mubr.f32.mxu1 %v381_v32  ;;  %v2492_v29 = vpack.c.bf16 %v810_v27, %v809_v17  ;;  %v812_v35 = vld [vmem:[%s3586_s5 + $0x28] sm:$0xff]  ;;  %2491 = vmatpush3.bf16.msra.mxu1 %v2488_v22 }
 0x13a   :  { %2115 = vmatmul.mubr.f32.gmra.mrb[8].mxu1 %v382_v37  ;;  %v384_v50 = vmax.f32 %v3118_v34, 0.0  ;;  %v3204_v17 = vld [vmem:[%s3583_s2 + $0x8] sm:$0xff] }
 0x13b   :  { %v2066_v44 = vpop.f32.mrb[12].mxu0  ;;  %v383_v45 = vmax.f32 %v3121_v41, 0.0  ;;  %2493 = vmatprep.subr.bf16.mxu1 %v2492_v29 }
 0x13c   :  { %v3134_v46 = vmul.f32 %v2066_v44, %v126_v42  ;;  %v338_v48 = vpop.f32.mrb[13].mxu0  ;;  %v2496_v42 = vpack.c.bf16 %v812_v35, %v811_v30  ;;  %v814_v44 = vld [vmem:[%s3586_s5 + $0x38] sm:$0xff] }
 0x13d   :  { %v3137_v51 = vmul.f32 %v338_v48, %v125_v43  ;;  %2117 = vmatprep.mubr.f32.mxu1 %v383_v45  ;;  %v813_v43 = vld [vmem:[%s3586_s5 + $0x30] sm:$0xff]  ;;  %2495 = vmatpush3.bf16.msra.mxu1 %v2492_v29  ;;  %v3211_v29 = vld [vmem:[%s3583_s2] sm:$0xff] }
 0x13e   :  { %2118 = vmatmul.mubr.f32.gmra.mrb[10].mxu1 %v384_v50  ;;  %v3603_v2 = vmax.f32 %v3134_v46, 0.0  ;;  %2497 = vmatprep.subr.bf16.mxu1 %v2496_v42  ;;  %v2500_v48 = vpack.c.bf16 %v814_v44, %v813_v43  ;;  %v3220_v44 = vld [vmem:[%s3583_s2 + $0x18] sm:$0xff] }
 0x13f   :  { %v2069_v58 = vpop.f32.mrb[14].mxu0  ;;  %v3600_v59 = vmax.f32 %v3137_v51, 0.0  ;;  %v3645_v39 = vmax.f32 %v3137_v51, 0.0 }
 0x140   :  { %v3150_v60 = vmul.f32 %v2069_v58, %v128_v52  ;;  %v348_v63 = vpop.f32.mrb[15].mxu0  ;;  %v815_v52 = vld [vmem:[%s3586_s5 + $0x40] sm:$0xff] }
 0x141   :  { %v3153_v4 = vmul.f32 %v348_v63, %v127_v55  ;;  %2120 = vmatprep.mubr.f32.mxu1 %v3600_v59  ;;  %v816_v55 = vld [vmem:[%s3586_s5 + $0x48] sm:$0xff]  ;;  %2499 = vmatpush3.bf16.msra.mxu1 %v2496_v42  ;;  %v817_v63 = vld [vmem:[%s3586_s5 + $0x50] sm:$0xff] }
 0x142   :  { %2121 = vmatmul.mubr.f32.gmra.mrb[12].mxu1 %v3603_v2  ;;  %v3599_v10 = vmax.f32 %v3150_v60, 0.0  ;;  %2501 = vmatprep.subr.bf16.mxu1 %v2500_v48  ;;  %v2504_v58 = vpack.c.bf16 %v816_v55, %v815_v52  ;;  %v2508_v15 = vpack.c.bf16 %v818_v14, %v817_v63 }
 0x143   :  { %v3596_v7 = vmax.f32 %v3153_v4, 0.0  ;;  %v3647_v31 = vmax.f32 %v3153_v4, 0.0 }
 0x145   :  { %2123 = vmatprep.mubr.f32.mxu1 %v3596_v7  ;;  %2503 = vmatpush3.bf16.msra.mxu1 %v2500_v48 }
 0x146   :  { %2124 = vmatmul.mubr.f32.gmra.mrb[14].mxu1 %v3599_v10  ;;  %2505 = vmatprep.subr.bf16.mxu1 %v2504_v58 }
 0x149   :  { %2507 = vmatpush3.bf16.msra.mxu1 %v2504_v58 }
 0x14a   :  { %2509 = vmatprep.subr.bf16.mxu1 %v2508_v15 }
 0x14d   :  { %2511 = vmatpush3.bf16.msra.mxu1 %v2508_v15 }
 0x1fd   :  { %v2104_v22 = vpop.f32.mrb[0].mxu1 }
 0x1fe   :  { %v535_v27 = vsub.f32 %v2104_v22, %v374_v56  ;;  %v455_v30 = vpop.f32.mrb[1].mxu1 }
 0x1ff   :  { %v534_v35 = vsub.f32 %v455_v30, %v373_v53  ;;  %v3230_v53 = vld [vmem:[%s3583_s2 + $0x10] sm:$0xff] }
 0x200   :  { %v551_v42 = vmul.f32 %v535_v27, %v3204_v17 }
 0x201   :  { %v550_v43 = vmul.f32 %v534_v35, %v3211_v29  ;;  %v2107_v48 = vpop.f32.mrb[2].mxu1  ;;  %v3251_v35 = vld [vmem:[%s3583_s2 + $0x20] sm:$0xff] }
 0x202   :  { %v3223_v56 = vadd.f32 %v551_v42, %v3043_v47  ;;  %v537_v52 = vsub.f32 %v2107_v48, %v376_v0  ;;  %v465_v55 = vpop.f32.mrb[3].mxu1  ;;  %v3242_v0 = vld [vmem:[%s3583_s2 + $0x28] sm:$0xff] }
 0x203   :  { %v536_v58 = vsub.f32 %v465_v55, %v375_v61  ;;  %v3235_v63 = vadd.f32 %v550_v43, %v3045_v49 }
 0x204   :  { %v553_v14 = vmul.f32 %v537_v52, %v3220_v44  ;;  %v3595_v30 = vmax.f32 %v3223_v56, 0.0 }
 0x205   :  { %v552_v15 = vmul.f32 %v536_v58, %v3230_v53  ;;  %v2110_v22 = vpop.f32.mrb[4].mxu1  ;;  %v3594_v27 = vmax.f32 %v3235_v63, 0.0  ;;  %v3270_v58 = vld [vmem:[%s3583_s2 + $0x38] sm:$0xff] }
 0x206   :  { %v539_v61 = vsub.f32 %v2110_v22, %v378_v11  ;;  %v475_v42 = vpop.f32.mrb[5].mxu1  ;;  %v3254_v43 = vadd.f32 %v553_v14, %v3054_v54 }
 0x207   :  { %v538_v48 = vsub.f32 %v475_v42, %v377_v8  ;;  %2158 = vmatprep.mubr.f32.mxu0 %v3594_v27  ;;  %v3261_v52 = vadd.f32 %v552_v15, %v3057_v57  ;;  %v3278_v15 = vld [vmem:[%s3583_s2 + $0x30] sm:$0xff] }
 0x208   :  { %v555_v11 = vmul.f32 %v539_v61, %v3242_v0  ;;  %2159 = vmatmul.mubr.f32.vlgmr.msra.gmra.mrb[16].mxu0 %v3595_v30  ;;  %v3598_v42 = vmax.f32 %v3254_v43, 0.0 }
 0x209   :  { %v554_v55 = vmul.f32 %v538_v48, %v3251_v35  ;;  %v2113_v14 = vpop.f32.mrb[6].mxu1  ;;  %v3597_v8 = vmax.f32 %v3261_v52, 0.0 }
 0x20a   :  { %v541_v22 = vsub.f32 %v2113_v14, %v380_v24  ;;  %v485_v61 = vpop.f32.mrb[7].mxu1  ;;  %v3282_v48 = vadd.f32 %v555_v11, %v3070_v62  ;;  %v3298_v11 = vld [vmem:[%s3583_s2 + $0x48] sm:$0xff] }
 0x20b   :  { %v540_v27 = vsub.f32 %v485_v61, %v379_v19  ;;  %2161 = vmatprep.mubr.f32.mxu0 %v3597_v8  ;;  %v3289_v30 = vadd.f32 %v554_v55, %v3073_v1  ;;  %v3306_v55 = vld [vmem:[%s3583_s2 + $0x40] sm:$0xff] }
 0x20c   :  { %v557_v24 = vmul.f32 %v541_v22, %v3270_v58  ;;  %2162 = vmatmul.mubr.f32.gmra.mrb[18].mxu0 %v3598_v42  ;;  %v3602_v8 = vmax.f32 %v3282_v48, 0.0 }
 0x20d   :  { %v556_v14 = vmul.f32 %v540_v27, %v3278_v15  ;;  %v2116_v7 = vpop.f32.mrb[8].mxu1  ;;  %v3601_v19 = vmax.f32 %v3289_v30, 0.0 }
 0x20e   :  { %v543_v61 = vsub.f32 %v2116_v7, %v382_v37  ;;  %v495_v22 = vpop.f32.mrb[9].mxu1  ;;  %v3310_v27 = vadd.f32 %v557_v24, %v3086_v9  ;;  %v3326_v24 = vld [vmem:[%s3583_s2 + $0x58] sm:$0xff] }
 0x20f   :  { %v542_v42 = vsub.f32 %v495_v22, %v381_v32  ;;  %2164 = vmatprep.mubr.f32.mxu0 %v3601_v19  ;;  %v3317_v10 = vadd.f32 %v556_v14, %v3089_v13  ;;  %v3334_v14 = vld [vmem:[%s3583_s2 + $0x50] sm:$0xff] }
 0x210   :  { %v559_v37 = vmul.f32 %v543_v61, %v3298_v11  ;;  %2165 = vmatmul.mubr.f32.gmra.mrb[20].mxu0 %v3602_v8  ;;  %v3606_v19 = vmax.f32 %v3310_v27, 0.0 }
 0x211   :  { %v558_v7 = vmul.f32 %v542_v42, %v3306_v55  ;;  %v2119_v59 = vpop.f32.mrb[10].mxu1  ;;  %v3605_v32 = vmax.f32 %v3317_v10, 0.0 }
 0x212   :  { %v545_v22 = vsub.f32 %v2119_v59, %v384_v50  ;;  %v505_v61 = vpop.f32.mrb[11].mxu1  ;;  %v3338_v42 = vadd.f32 %v559_v37, %v3102_v20  ;;  %v3354_v37 = vld [vmem:[%s3583_s2 + $0x68] sm:$0xff] }
 0x213   :  { %v544_v8 = vsub.f32 %v505_v61, %v383_v45  ;;  %2167 = vmatprep.mubr.f32.mxu0 %v3605_v32  ;;  %v3345_v2 = vadd.f32 %v558_v7, %v3105_v25  ;;  %v3644_v61 = vmax.f32 %v3134_v46, 0.0  ;;  %v3362_v7 = vld [vmem:[%s3583_s2 + $0x60] sm:$0xff] }
 0x214   :  { %v561_v50 = vmul.f32 %v545_v22, %v3326_v24  ;;  %2168 = vmatmul.mubr.f32.gmra.mrb[22].mxu0 %v3606_v19  ;;  %v3612_v19 = vmax.f32 %v3338_v42, 0.0 }
 0x215   :  { %v560_v59 = vmul.f32 %v544_v8, %v3334_v14  ;;  %v2122_v40 = vpop.f32.mrb[12].mxu1  ;;  %v3611_v45 = vmax.f32 %v3345_v2, 0.0 }
 0x216   :  { %v547_v32 = vsub.f32 %v2122_v40, %v3644_v61  ;;  %v515_v22 = vpop.f32.mrb[13].mxu1  ;;  %v3366_v8 = vadd.f32 %v561_v50, %v3118_v34  ;;  %v3382_v50 = vld [vmem:[%s3583_s2 + $0x78] sm:$0xff] }
 0x217   :  { %v546_v38 = vsub.f32 %v515_v22, %v3645_v39  ;;  %2170 = vmatprep.mubr.f32.mxu0 %v3611_v45  ;;  %v3373_v36 = vadd.f32 %v560_v59, %v3121_v41  ;;  %v3646_v22 = vmax.f32 %v3150_v60, 0.0 }
 0x218   :  { %v563_v40 = vmul.f32 %v547_v32, %v3354_v37  ;;  %2171 = vmatmul.mubr.f32.gmra.mrb[24].mxu0 %v3612_v19  ;;  %v3390_v32 = vld [vmem:[%s3583_s2 + $0x70] sm:$0xff]  ;;  %v3623_v19 = vmax.f32 %v3366_v8, 0.0 }
 0x219   :  { %v562_v61 = vmul.f32 %v546_v38, %v3362_v7  ;;  %v2125_v33 = vpop.f32.mrb[14].mxu1  ;;  %v3622_v39 = vmax.f32 %v3373_v36, 0.0 }
 0x21a   :  { %v549_v45 = vsub.f32 %v2125_v33, %v3646_v22  ;;  %v525_v59 = vpop.f32.mrb[15].mxu1  ;;  %v3394_v38 = vadd.f32 %v563_v40, %v3134_v46 }
 0x21b   :  { %v548_v28 = vsub.f32 %v525_v59, %v3647_v31  ;;  %2173 = vmatprep.mubr.f32.mxu0 %v3622_v39  ;;  %v3401_v26 = vadd.f32 %v562_v61, %v3137_v51  ;;  %v819_v61 = vld [vmem:[%s3586_s5 + $0x60] sm:$0xff]  ;;  %v820_v59 = vld [vmem:[%s3586_s5 + $0x68] sm:$0xff] }
 0x21c   :  { %v565_v33 = vmul.f32 %v549_v45, %v3382_v50  ;;  %2174 = vmatmul.mubr.f32.gmra.mrb[26].mxu0 %v3623_v19  ;;  %v3621_v40 = vmax.f32 %v3394_v38, 0.0 }
 0x21d   :  { %v564_v22 = vmul.f32 %v548_v28, %v3390_v32  ;;  %v3620_v23 = vmax.f32 %v3401_v26, 0.0 }
 0x21e   :  { %v3410_v21 = vadd.f32 %v565_v33, %v3150_v60  ;;  %v2512_v33 = vpack.c.bf16 %v820_v59, %v819_v61  ;;  %v985_v61 = vld [vmem:[%s3588_s7 + $0x8] sm:$0xff] }
 0x21f   :  { %2176 = vmatprep.mubr.f32.mxu0 %v3620_v23  ;;  %v3415_v31 = vadd.f32 %v564_v22, %v3153_v4  ;;  %v821_v22 = vld [vmem:[%s3586_s5 + $0x70] sm:$0xff]  ;;  %v984_v23 = vld [vmem:[%s3588_s7] sm:$0xff] }
 0x220   :  { %2177 = vmatmul.mubr.f32.gmra.mrb[28].mxu0 %v3621_v40  ;;  %v3619_v28 = vmax.f32 %v3410_v21, 0.0  ;;  %2513 = vmatprep.subr.bf16.mxu1 %v2512_v33  ;;  %v2520_v59 = vpack.c.bf16 %v985_v61, %v984_v23  ;;  %v3649_v40 = vmax.f32 %v3235_v63, 0.0  ;;  %v3650_v23 = vmax.f32 %v3254_v43, 0.0 }
 0x221   :  { %v3618_v45 = vmax.f32 %v3415_v31, 0.0  ;;  %2515 = vmatpush3.bf16.msra.mxu1 %v2512_v33 }
 0x222   :  { %2521 = vmatprep.subr.bf16.mxu0 %v2520_v59 }
 0x223   :  { %2179 = vmatprep.mubr.f32.mxu0 %v3618_v45  ;;  %v822_v45 = vld [vmem:[%s3586_s5 + $0x78] sm:$0xff]  ;;  %2523 = vmatpush3.bf16.msra.mxu0 %v2520_v59 }
 0x224   :  { %2180 = vmatmul.mubr.f32.gmra.mrb[30].mxu0 %v3619_v28  ;;  %v2516_v28 = vpack.c.bf16 %v822_v45, %v821_v22  ;;  %2525 = vmatprep.subr.bf16.mxu0 %v2934_v5  ;;  %v3648_v45 = vmax.f32 %v3223_v56, 0.0  ;;  %v3651_v5 = vmax.f32 %v3261_v52, 0.0 }
 0x226   :  { %2517 = vmatprep.subr.bf16.mxu1 %v2516_v28 }
 0x227   :  { %2519 = vmatpush3.bf16.msra.mxu1 %v2516_v28 }
 0x228   :  { %2557 = vmatprep.subr.bf16.mxu1 %v2928_v3 }
 0x2db   :  { %v2160_v33 = vpop.f32.mrb[16].mxu0 }
 0x2dc   :  { %v744_v22 = vsub.f32 %v2160_v33, %v3648_v45  ;;  %v664_v28 = vpop.f32.mrb[17].mxu0 }
 0x2dd   :  { %v743_v39 = vsub.f32 %v664_v28, %v3649_v40 }
 0x2de   :  { %v760_v19 = vmul.f32 %v744_v22, %v3204_v17 }
 0x2df   :  { %v759_v18 = vmul.f32 %v743_v39, %v3211_v29  ;;  %v2163_v16 = vpop.f32.mrb[18].mxu0  ;;  %v3652_v29 = vmax.f32 %v3282_v48, 0.0  ;;  %v3655_v48 = vmax.f32 %v3317_v10, 0.0  ;;  %v3657_v10 = vmax.f32 %v3345_v2, 0.0 }
 0x2e0   :  { %v776_v12 = vadd.f32 %v760_v19, %v3043_v47  ;;  %v746_v61 = vsub.f32 %v2163_v16, %v3650_v23  ;;  %v674_v59 = vpop.f32.mrb[19].mxu0  ;;  %v3653_v16 = vmax.f32 %v3289_v30, 0.0  ;;  %v3659_v2 = vmax.f32 %v3373_v36, 0.0 }
 0x2e1   :  { %v745_v6 = vsub.f32 %v674_v59, %v3651_v5  ;;  %v775_v56 = vadd.f32 %v759_v18, %v3045_v49  ;;  %v3661_v36 = vmax.f32 %v3401_v26, 0.0  ;;  %v3663_v26 = vmax.f32 %v3415_v31, 0.0 }
 0x2e2   :  { %v762_v33 = vmul.f32 %v746_v61, %v3220_v44  ;;  %v792_v45 = vmax.f32 %v776_v12, 0.0  ;;  %v3654_v12 = vmax.f32 %v3310_v27, 0.0  ;;  %v3656_v27 = vmax.f32 %v3338_v42, 0.0 }
 0x2e3   :  { %v761_v63 = vmul.f32 %v745_v6, %v3230_v53  ;;  %v2166_v40 = vpop.f32.mrb[20].mxu0  ;;  %v791_v17 = vmax.f32 %v775_v56, 0.0  ;;  %v3658_v42 = vmax.f32 %v3366_v8, 0.0  ;;  %v3660_v8 = vmax.f32 %v3394_v38, 0.0 }
 0x2e4   :  { %v748_v39 = vsub.f32 %v2166_v40, %v3652_v29  ;;  %v684_v47 = vpop.f32.mrb[21].mxu0  ;;  %v778_v43 = vadd.f32 %v762_v33, %v3054_v54  ;;  %v3662_v38 = vmax.f32 %v3410_v21, 0.0 }
 0x2e5   :  { %v747_v19 = vsub.f32 %v684_v47, %v3653_v16  ;;  %2214 = vmatprep.mubr.f32.mxu1 %v791_v17  ;;  %v777_v5 = vadd.f32 %v761_v63, %v3057_v57 }
 0x2e6   :  { %v764_v18 = vmul.f32 %v748_v39, %v3242_v0  ;;  %2215 = vmatmul.mubr.f32.vlgmr.msra.gmra.mrb[16].mxu1 %v792_v45  ;;  %v794_v54 = vmax.f32 %v778_v43, 0.0 }
 0x2e7   :  { %v763_v6 = vmul.f32 %v747_v19, %v3251_v35  ;;  %v2169_v49 = vpop.f32.mrb[22].mxu0  ;;  %v793_v44 = vmax.f32 %v777_v5, 0.0  ;;  %2559 = vmatpush3.bf16.msra.mxu1 %v2928_v3 }
 0x2e8   :  { %v750_v53 = vsub.f32 %v2169_v49, %v3654_v12  ;;  %v694_v52 = vpop.f32.mrb[23].mxu0  ;;  %v780_v30 = vadd.f32 %v764_v18, %v3070_v62 }
 0x2e9   :  { %v749_v22 = vsub.f32 %v694_v52, %v3655_v48  ;;  %2217 = vmatprep.mubr.f32.mxu1 %v793_v44  ;;  %v779_v57 = vadd.f32 %v763_v6, %v3073_v1 }
 0x2ea   :  { %v766_v0 = vmul.f32 %v750_v53, %v3270_v58  ;;  %2218 = vmatmul.mubr.f32.gmra.mrb[18].mxu1 %v794_v54  ;;  %v796_v59 = vmax.f32 %v780_v30, 0.0 }
 0x2eb   :  { %v765_v35 = vmul.f32 %v749_v22, %v3278_v15  ;;  %v2172_v28 = vpop.f32.mrb[24].mxu0  ;;  %v795_v3 = vmax.f32 %v779_v57, 0.0  ;;  %v3665_v57 = vld [vmem:[#allocation17_spill] sm:$0xff] }
 0x2ec   :  { %v752_v23 = vsub.f32 %v2172_v28, %v3656_v27  ;;  %v704_v61 = vpop.f32.mrb[25].mxu0  ;;  %v782_v62 = vadd.f32 %v766_v0, %v3086_v9  ;;  %v3666_v0 = vld [vmem:[#allocation15_spill] sm:$0xff] }
 0x2ed   :  { %v751_v56 = vsub.f32 %v704_v61, %v3657_v10  ;;  %2220 = vmatprep.mubr.f32.mxu1 %v795_v3  ;;  %v781_v1 = vadd.f32 %v765_v35, %v3089_v13  ;;  %v3668_v35 = vld [vmem:[#allocation19_spill] sm:$0xff]  ;;  %v3670_v61 = vld [vmem:[#allocation21_spill] sm:$0xff] }
 0x2ee   :  { %v768_v58 = vmul.f32 %v752_v23, %v3298_v11  ;;  %2221 = vmatmul.mubr.f32.gmra.mrb[20].mxu1 %v796_v59  ;;  %v798_v45 = vmax.f32 %v782_v62, 0.0  ;;  %v3669_v23 = vld [vmem:[#allocation20_spill] sm:$0xff] }
 0x2ef   :  { %v767_v15 = vmul.f32 %v751_v56, %v3306_v55  ;;  %v2175_v33 = vpop.f32.mrb[26].mxu0  ;;  %v797_v63 = vmax.f32 %v781_v1, 0.0  ;;  %v2536_v59 = vpack.c.bf16 %v3670_v61, %v3669_v23  ;;  %v3671_v56 = vld [vmem:[#allocation22_spill] sm:$0xff]  ;;  %v3672_v1 = vld [vmem:[#allocation23_spill] sm:$0xff] }
 0x2f0   :  { %v754_v40 = vsub.f32 %v2175_v33, %v3658_v42  ;;  %v714_v17 = vpop.f32.mrb[27].mxu0  ;;  %v784_v9 = vadd.f32 %v768_v58, %v3102_v20  ;;  %v2540_v58 = vpack.c.bf16 %v3672_v1, %v3671_v56  ;;  %v3674_v42 = vld [vmem:[#allocation25_spill] sm:$0xff] }
 0x2f1   :  { %v753_v29 = vsub.f32 %v714_v17, %v3659_v2  ;;  %2223 = vmatprep.mubr.f32.mxu1 %v797_v63  ;;  %v783_v13 = vadd.f32 %v767_v15, %v3105_v25  ;;  %v3673_v63 = vld [vmem:[#allocation24_spill] sm:$0xff]  ;;  %v3676_v2 = vld [vmem:[#allocation27_spill] sm:$0xff] }
 0x2f2   :  { %v770_v11 = vmul.f32 %v754_v40, %v3326_v24  ;;  %2224 = vmatmul.mubr.f32.gmra.mrb[22].mxu1 %v798_v45  ;;  %v800_v19 = vmax.f32 %v784_v9, 0.0  ;;  %v2544_v40 = vpack.c.bf16 %v3674_v42, %v3673_v63  ;;  %v3675_v9 = vld [vmem:[#allocation26_spill] sm:$0xff]  ;;  %v1642_v63 = vld [vmem:[#allocation8] sm:$0xff] }
 0x2f3   :  { %v769_v55 = vmul.f32 %v753_v29, %v3334_v14  ;;  %v2178_v39 = vpop.f32.mrb[28].mxu0  ;;  %v799_v47 = vmax.f32 %v783_v13, 0.0  ;;  %v2548_v29 = vpack.c.bf16 %v3676_v2, %v3675_v9  ;;  %v1643_v42 = vld [vmem:[#allocation8 + $0x8] sm:$0xff]  ;;  %v1646_v2 = vld [vmem:[#allocation8 + $0x20] sm:$0xff] }
 0x2f4   :  { %v756_v43 = vsub.f32 %v2178_v39, %v3660_v8  ;;  %v724_v16 = vpop.f32.mrb[29].mxu0  ;;  %v786_v20 = vadd.f32 %v770_v11, %v3118_v34  ;;  %v3678_v39 = vld [vmem:[#allocation29_spill] sm:$0xff] }
 0x2f5   :  { %v755_v5 = vsub.f32 %v724_v16, %v3661_v36  ;;  %2226 = vmatprep.mubr.f32.mxu1 %v799_v47  ;;  %v785_v25 = vadd.f32 %v769_v55, %v3121_v41  ;;  %v3677_v55 = vld [vmem:[#allocation28_spill] sm:$0xff]  ;;  %v968_v16 = vld [vmem:[#allocation5] sm:$0xff] }
 0x2f6   :  { %v772_v24 = vmul.f32 %v756_v43, %v3354_v37  ;;  %2227 = vmatmul.mubr.f32.gmra.mrb[24].mxu1 %v800_v19  ;;  %v802_v12 = vmax.f32 %v786_v20, 0.0  ;;  %v2552_v47 = vpack.c.bf16 %v3678_v39, %v3677_v55  ;;  %v969_v19 = vld [vmem:[#allocation5 + $0x8] sm:$0xff]  ;;  %v970_v20 = vld [vmem:[#allocation5 + $0x10] sm:$0xff]  ;;  %v971_v36 = vld [vmem:[#allocation5 + $0x18] sm:$0xff] }
 0x2f7   :  { %v771_v14 = vmul.f32 %v755_v5, %v3362_v7  ;;  %v2181_v18 = vpop.f32.mrb[30].mxu0  ;;  %v801_v6 = vmax.f32 %v785_v25, 0.0  ;;  %v972_v5 = vld [vmem:[#allocation5 + $0x20] sm:$0xff]  ;;  %v973_v25 = vld [vmem:[#allocation5 + $0x28] sm:$0xff]  ;;  %v1649_v55 = vld [vmem:[#allocation8 + $0x38] sm:$0xff] }
 0x2f8   :  { %v758_v49 = vsub.f32 %v2181_v18, %v3662_v38  ;;  %v734_v44 = vpop.f32.mrb[31].mxu0  ;;  %v788_v34 = vadd.f32 %v772_v24, %v3134_v46  ;;  %v974_v24 = vld [vmem:[#allocation5 + $0x30] sm:$0xff]  ;;  %v976_v18 = vld [vmem:[#allocation5 + $0x40] sm:$0xff] }
 0x2f9   :  { %v757_v53 = vsub.f32 %v734_v44, %v3663_v26  ;;  %2229 = vmatprep.mubr.f32.mxu1 %v801_v6  ;;  %v787_v41 = vadd.f32 %v771_v14, %v3137_v51  ;;  %v3664_v51 = vld [vmem:[#allocation16_spill] sm:$0xff]  ;;  %v977_v6 = vld [vmem:[#allocation5 + $0x48] sm:$0xff]  ;;  %v978_v38 = vld [vmem:[#allocation5 + $0x50] sm:$0xff] }
 0x2fa   :  { %v774_v37 = vmul.f32 %v758_v49, %v3382_v50  ;;  %2230 = vmatmul.mubr.f32.gmra.mrb[26].mxu1 %v802_v12  ;;  %v804_v54 = vmax.f32 %v788_v34, 0.0  ;;  %v2528_v50 = vpack.c.bf16 %v3665_v57, %v3664_v51  ;;  %v975_v14 = vld [vmem:[#allocation5 + $0x38] sm:$0xff]  ;;  %v980_v44 = vld [vmem:[#allocation5 + $0x60] sm:$0xff]  ;;  %v981_v12 = vld [vmem:[#allocation5 + $0x68] sm:$0xff] }
 0x2fb   :  { %v773_v7 = vmul.f32 %v757_v53, %v3390_v32  ;;  %v803_v52 = vmax.f32 %v787_v41, 0.0  ;;  %v979_v49 = vld [vmem:[#allocation5 + $0x58] sm:$0xff]  ;;  %v982_v34 = vld [vmem:[#allocation5 + $0x70] sm:$0xff] }
 0x2fc   :  { %v790_v21 = vadd.f32 %v774_v37, %v3150_v60  ;;  %v983_v26 = vld [vmem:[#allocation5 + $0x78] sm:$0xff] }
 0x2fd   :  { %2232 = vmatprep.mubr.f32.mxu1 %v803_v52  ;;  %v789_v30 = vadd.f32 %v773_v7, %v3153_v4  ;;  %v3667_v4 = vld [vmem:[#allocation18_spill] sm:$0xff] }
 0x2fe   :  { %2233 = vmatmul.mubr.f32.gmra.mrb[28].mxu1 %v804_v54  ;;  %v806_v48 = vmax.f32 %v790_v21, 0.0  ;;  %v2532_v28 = vpack.c.bf16 %v3668_v35, %v3667_v4 }
 0x2ff   :  { %v805_v46 = vmax.f32 %v789_v30, 0.0 }
 0x301   :  { %2235 = vmatprep.mubr.f32.mxu1 %v805_v46 }
 0x302   :  { %2236 = vmatmul.mubr.f32.gmra.mrb[30].mxu1 %v806_v48 }
 0x3b9   :  { %v2216_v31 = vpop.f32.mrb[16].mxu1 }
 0x3ba   :  { %v889_v22 = vpop.f32.mrb[17].mxu1 }
 0x3bb   :  { %2242 = vmatprep.mubr.msk.f32.mxu0 %vm163_vm0, %v889_v22 }
 0x3bc   :  { %2243 = vmatmul.mubr.msk.f32.vlgmr.msra.gmra.mrb[32].mxu0 %vm163_vm0, %v2216_v31 }
 0x3bd   :  { %v2219_v32 = vpop.f32.mrb[18].mxu1  ;;  %2527 = vmatpush3.bf16.msra.mxu0 %v3666_v0 }
 0x3be   :  { %v899_v60 = vpop.f32.mrb[19].mxu1  ;;  %2529 = vmatprep.subr.bf16.mxu0 %v2528_v50 }
 0x3bf   :  { %2245 = vmatprep.mubr.msk.f32.mxu0 %vm163_vm0, %v899_v60 }
 0x3c0   :  { %2246 = vmatmul.mubr.msk.f32.gmra.mrb[34].mxu0 %vm163_vm0, %v2219_v32 }
 0x3c1   :  { %v2222_v3 = vpop.f32.mrb[20].mxu1  ;;  %2531 = vmatpush3.bf16.msra.mxu0 %v2528_v50 }
 0x3c2   :  { %v909_v27 = vpop.f32.mrb[21].mxu1  ;;  %2533 = vmatprep.subr.bf16.mxu0 %v2532_v28 }
 0x3c3   :  { %2248 = vmatprep.mubr.msk.f32.mxu0 %vm163_vm0, %v909_v27 }
 0x3c4   :  { %2249 = vmatmul.mubr.msk.f32.gmra.mrb[36].mxu0 %vm163_vm0, %v2222_v3 }
 0x3c5   :  { %v2225_v62 = vpop.f32.mrb[22].mxu1  ;;  %2535 = vmatpush3.bf16.msra.mxu0 %v2532_v28 }
 0x3c6   :  { %v919_v10 = vpop.f32.mrb[23].mxu1  ;;  %2537 = vmatprep.subr.bf16.mxu0 %v2536_v59 }
 0x3c7   :  { %2251 = vmatprep.mubr.msk.f32.mxu0 %vm163_vm0, %v919_v10 }
 0x3c8   :  { %2252 = vmatmul.mubr.msk.f32.gmra.mrb[38].mxu0 %vm163_vm0, %v2225_v62 }
 0x3c9   :  { %v2228_v15 = vpop.f32.mrb[24].mxu1  ;;  %2539 = vmatpush3.bf16.msra.mxu0 %v2536_v59 }
 0x3ca   :  { %v929_v33 = vpop.f32.mrb[25].mxu1  ;;  %2541 = vmatprep.subr.bf16.mxu0 %v2540_v58 }
 0x3cb   :  { %2254 = vmatprep.mubr.msk.f32.mxu0 %vm163_vm0, %v929_v33  ;;  %v1533_v33 = vld [vmem:[%s3590_s9] sm:$0xff] }
 0x3cc   :  { %2255 = vmatmul.mubr.msk.f32.gmra.mrb[40].mxu0 %vm163_vm0, %v2228_v15 }
 0x3cd   :  { %v2231_v17 = vpop.f32.mrb[26].mxu1  ;;  %2543 = vmatpush3.bf16.msra.mxu0 %v2540_v58 }
 0x3ce   :  { %v939_v45 = vpop.f32.mrb[27].mxu1  ;;  %2545 = vmatprep.subr.bf16.mxu0 %v2544_v40 }
 0x3cf   :  { %2257 = vmatprep.mubr.msk.f32.mxu0 %vm163_vm0, %v939_v45  ;;  %v1645_v45 = vld [vmem:[#allocation8 + $0x18] sm:$0xff] }
 0x3d0   :  { %2258 = vmatmul.mubr.msk.f32.gmra.mrb[42].mxu0 %vm163_vm0, %v2231_v17  ;;  %v2592_v17 = vpack.c.bf16 %v1643_v42, %v1642_v63  ;;  %v1548_v42 = vld [vmem:[#allocation7 + $0x68] sm:$0xff] }
 0x3d1   :  { %v2234_v13 = vpop.f32.mrb[28].mxu1  ;;  %2547 = vmatpush3.bf16.msra.mxu0 %v2544_v40  ;;  %v1644_v40 = vld [vmem:[#allocation8 + $0x10] sm:$0xff] }
 0x3d2   :  { %v949_v11 = vpop.f32.mrb[29].mxu1  ;;  %2549 = vmatprep.subr.bf16.mxu0 %v2548_v29  ;;  %v2596_v9 = vpack.c.bf16 %v1645_v45, %v1644_v40  ;;  %v1547_v40 = vld [vmem:[#allocation7 + $0x60] sm:$0xff] }
 0x3d3   :  { %2260 = vmatprep.mubr.msk.f32.mxu0 %vm163_vm0, %v949_v11  ;;  %v1648_v11 = vld [vmem:[#allocation8 + $0x30] sm:$0xff] }
 0x3d4   :  { %2261 = vmatmul.mubr.msk.f32.gmra.mrb[44].mxu0 %vm163_vm0, %v2234_v13  ;;  %v2604_v39 = vpack.c.bf16 %v1649_v55, %v1648_v11  ;;  %v1549_v11 = vld [vmem:[#allocation7 + $0x70] sm:$0xff] }
 0x3d5   :  { %v2237_v8 = vpop.f32.mrb[30].mxu1  ;;  %2551 = vmatpush3.bf16.msra.mxu0 %v2548_v29  ;;  %v1647_v29 = vld [vmem:[#allocation8 + $0x28] sm:$0xff] }
 0x3d6   :  { %v959_v43 = vpop.f32.mrb[31].mxu1  ;;  %2553 = vmatprep.subr.bf16.mxu0 %v2552_v47  ;;  %v2600_v13 = vpack.c.bf16 %v1647_v29, %v1646_v2 }
 0x3d7   :  { %2263 = vmatprep.mubr.msk.f32.mxu0 %vm163_vm0, %v959_v43 }
 0x3d8   :  { %2264 = vmatmul.mubr.msk.f32.gmra.mrb[46].mxu0 %vm163_vm0, %v2237_v8  ;;  %v1651_v8 = vld [vmem:[#allocation8 + $0x48] sm:$0xff] }
 0x3d9   :  { %2555 = vmatpush3.bf16.msra.mxu0 %v2552_v47  ;;  %2298 = vmatprep.mubr.f32.mxu0 %v968_v16  ;;  %v1650_v47 = vld [vmem:[#allocation8 + $0x40] sm:$0xff]  ;;  %v1652_v16 = vld [vmem:[#allocation8 + $0x50] sm:$0xff] }
 0x3da   :  { %2593 = vmatprep.subr.bf16.mxu0 %v2592_v17  ;;  %v2608_v43 = vpack.c.bf16 %v1651_v8, %v1650_v47 }
 0x3dc   :  { %2299 = vmatmul.mubr.f32.vlgmr.msra.gmra.mrb[32].mxu0 %v969_v19  ;;  %v1653_v19 = vld [vmem:[#allocation8 + $0x58] sm:$0xff] }
 0x3dd   :  { %2301 = vmatprep.mubr.f32.mxu0 %v970_v20  ;;  %2595 = vmatpush3.bf16.msra.mxu0 %v2592_v17  ;;  %v2612_v20 = vpack.c.bf16 %v1653_v19, %v1652_v16  ;;  %v1534_v19 = vld [vmem:[%s3590_s9 + $0x8] sm:$0xff]  ;;  %s2779_s9 = smov [#allocation10]  }
 0x3de   :  { %2597 = vmatprep.subr.bf16.mxu0 %v2596_v9  ;;  %s1759_s25 = sshll.u32 %s2779_s9, 4  ;;  %s1760_s25 = int_to_ptr.vmem [resolvable:$true] %s1759_s25 }
 0x3df   :  { %p2748_p5 = scmp.lt.s32.totalorder %s1760_s25, %s1760_s25 }
 0x3e0   :  { %2302 = vmatmul.mubr.f32.gmra.mrb[34].mxu0 %v971_v36  ;;  %v1654_v36 = vld [vmem:[#allocation8 + $0x60] sm:$0xff] }
 0x3e1   :  { %2304 = vmatprep.mubr.f32.mxu0 %v972_v5  ;;  %2599 = vmatpush3.bf16.msra.mxu0 %v2596_v9  ;;  %v1655_v5 = vld [vmem:[#allocation8 + $0x68] sm:$0xff] }
 0x3e2   :  { %2601 = vmatprep.subr.bf16.mxu0 %v2600_v13 }
 0x3e4   :  { %2305 = vmatmul.mubr.f32.gmra.mrb[36].mxu0 %v973_v25  ;;  %v2616_v25 = vpack.c.bf16 %v1655_v5, %v1654_v36  ;;  %v1821_v5 = vld [vmem:[%s3592_s11] ss:$0 sm:$0xff]  ;;  %s2743_s11 = scalar_lea.vmem %s1760_s25, 256 }
 0x3e5   :  { %2307 = vmatprep.mubr.f32.mxu0 %v974_v24  ;;  %2603 = vmatpush3.bf16.msra.mxu0 %v2600_v13  ;;  %v1656_v24 = vld [vmem:[#allocation8 + $0x70] sm:$0xff]  ;;  %v1550_v13 = vld [vmem:[#allocation7 + $0x78] sm:$0xff]  ;;  %p2744_p4 = scmp.ne.s32.totalorder %s1760_s25, %s2743_s11  ;;  %p2749_p6 = scmp.lt.s32.totalorder %s2743_s11, %s2743_s11 }
 0x3e6   :  { %2605 = vmatprep.subr.bf16.mxu0 %v2604_v39 }
 0x3e7   :  { %p2750_p7 = por %p2749_p6, %p2748_p5 }
 0x3e8   :  { %2308 = vmatmul.mubr.f32.gmra.mrb[38].mxu0 %v975_v14  ;;  %v1657_v14 = vld [vmem:[#allocation8 + $0x78] sm:$0xff] }
 0x3e9   :  { %2310 = vmatprep.mubr.f32.mxu0 %v976_v18  ;;  %2607 = vmatpush3.bf16.msra.mxu0 %v2604_v39  ;;  %v2620_v18 = vpack.c.bf16 %v1657_v14, %v1656_v24  ;;  %p2751_p8 = pnand %p2750_p7, %p2744_p4 }
 0x3ea   :  { %2609 = vmatprep.subr.bf16.mxu0 %v2608_v43 }
 0x3ec   :  { %2311 = vmatmul.mubr.f32.gmra.mrb[40].mxu0 %v977_v6  ;;  %v1536_v6 = vld [vmem:[#allocation7 + $0x8] sm:$0xff] }
 0x3ed   :  { %2313 = vmatprep.mubr.f32.mxu0 %v978_v38  ;;  %2611 = vmatpush3.bf16.msra.mxu0 %v2608_v43  ;;  %v1535_v38 = vld [vmem:[#allocation7] sm:$0xff] }
 0x3ee   :  { %2613 = vmatprep.subr.bf16.mxu0 %v2612_v20 }
 0x3f0   :  { %2314 = vmatmul.mubr.f32.gmra.mrb[42].mxu0 %v979_v49 }
 0x3f1   :  { %2316 = vmatprep.mubr.f32.mxu0 %v980_v44  ;;  %2615 = vmatpush3.bf16.msra.mxu0 %v2612_v20 }
 0x3f2   :  { %2617 = vmatprep.subr.bf16.mxu0 %v2616_v25 }
 0x3f4   :  { %2317 = vmatmul.mubr.f32.gmra.mrb[44].mxu0 %v981_v12 }
 0x3f5   :  { %2319 = vmatprep.mubr.f32.mxu0 %v982_v34  ;;  %2619 = vmatpush3.bf16.msra.mxu0 %v2616_v25 }
 0x3f6   :  { %2621 = vmatprep.subr.bf16.mxu0 %v2620_v18 }
 0x3f8   :  { %2320 = vmatmul.mubr.f32.gmra.mrb[46].mxu0 %v983_v26  ;;  %v1538_v26 = vld [vmem:[#allocation7 + $0x18] sm:$0xff] }
 0x3f9   :  { %2623 = vmatpush3.bf16.msra.mxu0 %v2620_v18 }
 0x4af   :  { %v2300_v53 = vpop.f32.mrb[32].mxu0 }
 0x4b0   :  { %v1245_v41 = vpop.f32.mrb[33].mxu0  ;;  %v1325_v7 = vmax.f32 %v2300_v53, 0.0  ;;  %v1537_v53 = vld [vmem:[#allocation7 + $0x10] sm:$0xff] }
 0x4b1   :  { %v1324_v37 = vmax.f32 %v1245_v41, 0.0 }
 0x4b3   :  { %v2303_v52 = vpop.f32.mrb[34].mxu0  ;;  %2326 = vmatprep.mubr.msk.f32.mxu1 %vm163_vm0, %v1324_v37 }
 0x4b4   :  { %v1255_v54 = vpop.f32.mrb[35].mxu0  ;;  %2327 = vmatmul.mubr.msk.f32.vlgmr.msra.gmra.mrb[32].mxu1 %vm163_vm0, %v1325_v7  ;;  %v1327_v30 = vmax.f32 %v2303_v52, 0.0 }
 0x4b5   :  { %v1326_v21 = vmax.f32 %v1255_v54, 0.0 }
 0x4b7   :  { %v2306_v46 = vpop.f32.mrb[36].mxu0  ;;  %2329 = vmatprep.mubr.msk.f32.mxu1 %vm163_vm0, %v1326_v21  ;;  %v1540_v21 = vld [vmem:[#allocation7 + $0x28] sm:$0xff] }
 0x4b8   :  { %v1265_v48 = vpop.f32.mrb[37].mxu0  ;;  %2330 = vmatmul.mubr.msk.f32.gmra.mrb[34].mxu1 %vm163_vm0, %v1327_v30  ;;  %v1329_v22 = vmax.f32 %v2306_v46, 0.0  ;;  %v1539_v30 = vld [vmem:[#allocation7 + $0x20] sm:$0xff] }
 0x4b9   :  { %v1328_v31 = vmax.f32 %v1265_v48, 0.0 }
 0x4bb   :  { %v2309_v51 = vpop.f32.mrb[38].mxu0  ;;  %2332 = vmatprep.mubr.msk.f32.mxu1 %vm163_vm0, %v1328_v31 }
 0x4bc   :  { %v1275_v57 = vpop.f32.mrb[39].mxu0  ;;  %2333 = vmatmul.mubr.msk.f32.gmra.mrb[36].mxu1 %vm163_vm0, %v1329_v22  ;;  %v1331_v32 = vmax.f32 %v2309_v51, 0.0 }
 0x4bd   :  { %v1330_v50 = vmax.f32 %v1275_v57, 0.0  ;;  %v1542_v57 = vld [vmem:[#allocation7 + $0x38] sm:$0xff] }
 0x4bf   :  { %v2312_v0 = vpop.f32.mrb[40].mxu0  ;;  %2335 = vmatprep.mubr.msk.f32.mxu1 %vm163_vm0, %v1330_v50  ;;  %v1541_v50 = vld [vmem:[#allocation7 + $0x30] sm:$0xff] }
 0x4c0   :  { %v1285_v60 = vpop.f32.mrb[41].mxu0  ;;  %2336 = vmatmul.mubr.msk.f32.gmra.mrb[38].mxu1 %vm163_vm0, %v1331_v32  ;;  %v1333_v35 = vmax.f32 %v2312_v0, 0.0 }
 0x4c1   :  { %v1332_v4 = vmax.f32 %v1285_v60, 0.0 }
 0x4c3   :  { %v2315_v28 = vpop.f32.mrb[42].mxu0  ;;  %2338 = vmatprep.mubr.msk.f32.mxu1 %vm163_vm0, %v1332_v4 }
 0x4c4   :  { %v1295_v3 = vpop.f32.mrb[43].mxu0  ;;  %2339 = vmatmul.mubr.msk.f32.gmra.mrb[40].mxu1 %vm163_vm0, %v1333_v35  ;;  %v1335_v23 = vmax.f32 %v2315_v28, 0.0  ;;  %v1544_v28 = vld [vmem:[#allocation7 + $0x48] sm:$0xff] }
 0x4c5   :  { %v1334_v27 = vmax.f32 %v1295_v3, 0.0  ;;  %v1543_v3 = vld [vmem:[#allocation7 + $0x40] sm:$0xff] }
 0x4c7   :  { %v2318_v61 = vpop.f32.mrb[44].mxu0  ;;  %2341 = vmatprep.mubr.msk.f32.mxu1 %vm163_vm0, %v1334_v27 }
 0x4c8   :  { %v1305_v59 = vpop.f32.mrb[45].mxu0  ;;  %2342 = vmatmul.mubr.msk.f32.gmra.mrb[42].mxu1 %vm163_vm0, %v1335_v23  ;;  %v1337_v10 = vmax.f32 %v2318_v61, 0.0 }
 0x4c9   :  { %v1336_v62 = vmax.f32 %v1305_v59, 0.0 }
 0x4cb   :  { %v2321_v56 = vpop.f32.mrb[46].mxu0  ;;  %2344 = vmatprep.mubr.msk.f32.mxu1 %vm163_vm0, %v1336_v62 }
 0x4cc   :  { %v1315_v1 = vpop.f32.mrb[47].mxu0  ;;  %2345 = vmatmul.mubr.msk.f32.gmra.mrb[44].mxu1 %vm163_vm0, %v1337_v10  ;;  %v1339_v15 = vmax.f32 %v2321_v56, 0.0  ;;  %v1546_v10 = vld [vmem:[#allocation7 + $0x58] sm:$0xff]  ;;  %v1545_v56 = vld [vmem:[#allocation7 + $0x50] sm:$0xff] }
 0x4cd   :  { %v1338_v58 = vmax.f32 %v1315_v1, 0.0 }
 0x4cf   :  { %2347 = vmatprep.mubr.msk.f32.mxu1 %vm163_vm0, %v1338_v58 }
 0x4d0   :  { %2348 = vmatmul.mubr.msk.f32.gmra.mrb[46].mxu1 %vm163_vm0, %v1339_v15 }
 0x4d1   :  { %2382 = vmatprep.mubr.f32.mxu1 %v1533_v33 }
 0x587   :  { %v2328_v49 = vpop.f32.mrb[32].mxu1 }
 0x588   :  { %v1552_v44 = vmul.f32 %v2328_v49, %v1536_v6  ;;  %v1454_v12 = vpop.f32.mrb[33].mxu1 }
 0x589   :  { %v1551_v34 = vmul.f32 %v1535_v38, %v1454_v12 }
 0x58b   :  { %v2560_v41 = vpack.c.bf16 %v1552_v44, %v1551_v34  ;;  %v2331_v37 = vpop.f32.mrb[34].mxu1 }
 0x58c   :  { %v1554_v7 = vmul.f32 %v2331_v37, %v1538_v26  ;;  %v1464_v52 = vpop.f32.mrb[35].mxu1 }
 0x58d   :  { %v1553_v54 = vmul.f32 %v1537_v53, %v1464_v52  ;;  %2561 = vmatprep.subr.bf16.mxu1 %v2560_v41 }
 0x58e   :  { %2563 = vmatpush3.bf16.msra.mxu1 %v2560_v41 }
 0x58f   :  { %v2564_v46 = vpack.c.bf16 %v1554_v7, %v1553_v54  ;;  %v2334_v48 = vpop.f32.mrb[36].mxu1 }
 0x590   :  { %v1556_v31 = vmul.f32 %v2334_v48, %v1540_v21  ;;  %v1474_v22 = vpop.f32.mrb[37].mxu1 }
 0x591   :  { %v1555_v51 = vmul.f32 %v1539_v30, %v1474_v22  ;;  %2565 = vmatprep.subr.bf16.mxu1 %v2564_v46 }
 0x592   :  { %2567 = vmatpush3.bf16.msra.mxu1 %v2564_v46 }
 0x593   :  { %v2568_v32 = vpack.c.bf16 %v1556_v31, %v1555_v51  ;;  %v2337_v0 = vpop.f32.mrb[38].mxu1 }
 0x594   :  { %v1558_v60 = vmul.f32 %v2337_v0, %v1542_v57  ;;  %v1484_v4 = vpop.f32.mrb[39].mxu1 }
 0x595   :  { %v1557_v35 = vmul.f32 %v1541_v50, %v1484_v4  ;;  %2569 = vmatprep.subr.bf16.mxu1 %v2568_v32 }
 0x596   :  { %2571 = vmatpush3.bf16.msra.mxu1 %v2568_v32 }
 0x597   :  { %v2572_v27 = vpack.c.bf16 %v1558_v60, %v1557_v35  ;;  %v2340_v23 = vpop.f32.mrb[40].mxu1 }
 0x598   :  { %v1560_v61 = vmul.f32 %v2340_v23, %v1544_v28  ;;  %v1494_v59 = vpop.f32.mrb[41].mxu1 }
 0x599   :  { %v1559_v62 = vmul.f32 %v1543_v3, %v1494_v59  ;;  %2573 = vmatprep.subr.bf16.mxu1 %v2572_v27 }
 0x59a   :  { %2575 = vmatpush3.bf16.msra.mxu1 %v2572_v27 }
 0x59b   :  { %v2576_v1 = vpack.c.bf16 %v1560_v61, %v1559_v62  ;;  %v2343_v58 = vpop.f32.mrb[42].mxu1 }
 0x59c   :  { %v1562_v15 = vmul.f32 %v2343_v58, %v1546_v10  ;;  %v1504_v33 = vpop.f32.mrb[43].mxu1 }
 0x59d   :  { %v1561_v63 = vmul.f32 %v1545_v56, %v1504_v33  ;;  %2577 = vmatprep.subr.bf16.mxu1 %v2576_v1 }
 0x59e   :  { %2579 = vmatpush3.bf16.msra.mxu1 %v2576_v1 }
 0x59f   :  { %v2580_v17 = vpack.c.bf16 %v1562_v15, %v1561_v63  ;;  %v2346_v45 = vpop.f32.mrb[44].mxu1 }
 0x5a0   :  { %v1564_v9 = vmul.f32 %v2346_v45, %v1548_v42  ;;  %v1514_v2 = vpop.f32.mrb[45].mxu1 }
 0x5a1   :  { %v1563_v29 = vmul.f32 %v1547_v40, %v1514_v2  ;;  %2581 = vmatprep.subr.bf16.mxu1 %v2580_v17 }
 0x5a2   :  { %2583 = vmatpush3.bf16.msra.mxu1 %v2580_v17 }
 0x5a3   :  { %v2584_v55 = vpack.c.bf16 %v1564_v9, %v1563_v29  ;;  %v2349_v39 = vpop.f32.mrb[46].mxu1 }
 0x5a4   :  { %v1566_v47 = vmul.f32 %v2349_v39, %v1550_v13  ;;  %v1524_v8 = vpop.f32.mrb[47].mxu1 }
 0x5a5   :  { %v1565_v43 = vmul.f32 %v1549_v11, %v1524_v8  ;;  %2585 = vmatprep.subr.bf16.mxu1 %v2584_v55 }
 0x5a6   :  { %2587 = vmatpush3.bf16.msra.mxu1 %v2584_v55 }
 0x5a7   :  { %v2588_v16 = vpack.c.bf16 %v1566_v47, %v1565_v43 }
 0x5a9   :  { %2589 = vmatprep.subr.bf16.mxu1 %v2588_v16 }
 0x5aa   :  { %2591 = vmatpush3.bf16.msra.mxu1 %v2588_v16 }
 0x5ad   :  { %2383 = vmatmul.mubr.f32.vlgmr.msra.gmra.mrb[48].mxu1 %v1534_v19 }
 0x680   :  { %v2384_v20 = vpop.f32.mrb[48].mxu1 }
 0x681   :  { %v1633_v36 = vpop.f32.mrb[49].mxu1 }
 0x682   :  { %2417 = vmatprep.mubr.f32.mxu0 %v1633_v36 }
 0x683   :  { %2418 = vmatmul.mubr.f32.vlgmr.msra.gmra.mrb[48].mxu0 %v2384_v20 }
 0x756   :  { %v2419_v25 = vpop.f32.mrb[48].mxu0 }
 0x757   :  { %v1737_v24 = vadd.f32 %v2419_v25, %v1821_v5  ;;  %v1731_v14 = vpop.f32.mrb[49].mxu0 }
 0x758   :  { %v1732_v18 = vadd.f32 %v1821_v5, %v1731_v14 }
 0x759   :  { %v1823_v6 = vmul.f32 -1.442695, %v1737_v24 }
 0x75a   :  { %v1822_v38 = vmul.f32 -1.442695, %v1732_v18 }
 0x75b   :  { %2647 = vpow2.f32 %v1823_v6 }
 0x75c   :  { %2649 = vpow2.f32 %v1822_v38 }
 0x765   :  { %v2648_v49 = vpop.eup %2647 }
 0x766   :  { %v2650_v44 = vpop.eup %2649  ;;  %v1747_v12 = vadd.f32 1.0, %v2648_v49 }
 0x767   :  { %v1746_v34 = vadd.f32 1.0, %v2650_v44 }
 0x768   :  { %2651 = vrcp.f32 %v1747_v12 }
 0x769   :  { %2653 = vrcp.f32 %v1746_v34 }
 0x772   :  { %v2652_v26 = vpop.eup %2651 }
 0x773   :  { %v2654_v53 = vpop.eup %2653  ;;  %1753 = vst [vmem:[#allocation10 + $0x8] sm:$0xff] %v2652_v26 }
 0x774   :  { %1752 = vst [vmem:[#allocation10] sm:$0xff] %v2654_v53 }
 0x775   :  { %2754 = shalt.err (!%p2751_p8)
}
 0x776   :  { %s2755_s14 = scalar_lea.hbm %s3593_s12, 256 }
 0x777   :  { %p2756_p9 = scmp.ne.s32.totalorder %s3593_s12, %s2755_s14  ;;  %p2759_p10 = scmp.lt.u32.totalorder %s2755_s14, %s3593_s12 }
 0x779   :  { %p2761_p11 = pnand %p2759_p10, %p2756_p9 }
 0x77b   :  { %2764 = shalt.err (!%p2761_p11)
}
 0x77c   :  { %1765 = dma.vmem_to_hbm [thread:$0]  %s1760_s25, 256, %s3593_s12, [#allocation4], %s2775_s15, %s2775_s15, %s2776_s16  }
 0x77d   :  { %2771 = dma.done.wait [#allocation4], 256  }
 0x77e   :  { %2772 = vsyncadd [#allocation4], 4294967040 }
 0x77f   :  { %1769 = vsyncpa [#allocation3], 1 }
 0x780   :  { %1770 = vsyncpa [#allocation6], 1 }
 0x781   :  { %1771 = vsyncpa [#allocation9], 1 }
 0x782   :  { %1772 = vsyncpa [#allocation4], 1 }

</bundles_post_ra>
